<compile_context>
chip_gen: v7x
topology: tpu7x:2x2x1
jax: 0.10.0
libtpu: 0.0.40
codegen_flags: <defaults>
</compile_context>

<pallas_src>
import jax
import jax.numpy as jnp
from jax.experimental import pallas as pl
from jax.experimental.pallas import tpu as pltpu

# ----------------------------- config (small shapes) -----------------------------
N = 4                      # real batch (>1 so BatchNorm1d batch stats are meaningful)
NPAD = 8                   # batch padded to a full f32 sublane tile
IMG_C, IMG_H, IMG_W = 3, 16, 16
C_FEAT = 256               # stand-in for resnet.fc.in_features (=2048 in real ResNet-152)
HF = WF = 4                # stand-in trunk spatial output
S = HF * WF                # spatial positions removed by the global average pool
EMBED = 128                # embed_size
BN_EPS = 1e-5
IMG_FLAT = IMG_C * IMG_H * IMG_W           # 768  (multiple of 128)
FEAT_FLAT = C_FEAT * S                     # 4096; s-major flatten: column = s*C_FEAT + c
TILE_F = 512                               # streamed trunk-weight tile along FEAT_FLAT
S_PER_TILE = TILE_F // C_FEAT              # spatial chunks pooled per grid step
assert TILE_F % C_FEAT == 0 and FEAT_FLAT % TILE_F == 0


# ----------------------------- fused Pallas kernel -----------------------------
def fused_encoder_kernel(x_ref, wt_ref, wscale_ref, wlin_ref, gb_ref, o_ref, pool_ref):
    """Per grid step: dequant + trunk GEMM tile + tanh + partial avg-pool; epilogue at last step.

    x_ref      : (NPAD, IMG_FLAT)    f32   zero-padded flattened images (resident)
    wt_ref     : (IMG_FLAT, TILE_F)  int8  streamed trunk-weight tile (s-major columns)
    wscale_ref : (1, TILE_F)         f32   per-column dequant scales for this tile
    wlin_ref   : (C_FEAT, EMBED)     bf16  linear weight (resident; pool NOT folded in)
    gb_ref     : (8, EMBED)          f32   row 0 = BN gamma, row 1 = BN beta
    o_ref      : (NPAD, EMBED)       f32   output (rows >= N are padding, sliced off outside)
    pool_ref   : (NPAD, C_FEAT)      f32   scratch: running sum over spatial positions
    """
    k = pl.program_id(0)

    @pl.when(k == 0)
    def _():
        pool_ref[...] = jnp.zeros_like(pool_ref)

    # Dequantize the int8 weight tile on the VPU (hidden under the next tile's DMA),
    # then bf16 MXU GEMM with f32 accumulation; tanh in f32 on the EUP.
    wt = (wt_ref[...].astype(jnp.float32) * wscale_ref[...]).astype(jnp.bfloat16)
    feat = jnp.tanh(
        jnp.dot(x_ref[...].astype(jnp.bfloat16), wt,
                preferred_element_type=jnp.float32))               # (NPAD, TILE_F)

    # s-major layout: this tile holds S_PER_TILE contiguous (NPAD, C_FEAT) spatial chunks,
    # so the average pool is plain lane-aligned VPU adds (no XLU cross-lane reduce).
    acc = pool_ref[...]
    for s in range(S_PER_TILE):
        acc = acc + feat[:, s * C_FEAT:(s + 1) * C_FEAT]
    pool_ref[...] = acc

    @pl.when(k == pl.num_programs(0) - 1)
    def _():
        pooled = pool_ref[...] * (1.0 / S)                         # global average pool
        # Linear; bias dropped (it cancels exactly under training-mode BN centering).
        y = jnp.dot(pooled.astype(jnp.bfloat16), wlin_ref[...],
                    preferred_element_type=jnp.float32)            # (NPAD, EMBED)
        # BatchNorm1d, training-mode biased batch statistics over the REAL N rows only.
        gb = gb_ref[...]
        gamma, beta = gb[0:1, :], gb[1:2, :]
        row = jax.lax.broadcasted_iota(jnp.int32, (NPAD, EMBED), 0)
        valid = (row < N).astype(jnp.float32)                      # 1.0 on real rows
        mean = jnp.sum(y * valid, axis=0, keepdims=True) * (1.0 / N)
        centered = y - mean
        var = jnp.sum((centered * valid) ** 2, axis=0, keepdims=True) * (1.0 / N)
        o_ref[...] = gamma * centered * jax.lax.rsqrt(var + BN_EPS) + beta


def pallas_encoder(x_pad, w_trunk_i8, w_trunk_scale, w_lin_bf16, gb):
    n_tiles = FEAT_FLAT // TILE_F
    return pl.pallas_call(
        fused_encoder_kernel,
        out_shape=jax.ShapeDtypeStruct((NPAD, EMBED), jnp.float32),
        grid_spec=pltpu.PrefetchScalarGridSpec(
            num_scalar_prefetch=0,
            grid=(n_tiles,),
            in_specs=[
                pl.BlockSpec((NPAD, IMG_FLAT), lambda k: (0, 0)),     # images (resident)
                pl.BlockSpec((IMG_FLAT, TILE_F), lambda k: (0, k)),   # streamed int8 weight tile
                pl.BlockSpec((1, TILE_F), lambda k: (0, k)),          # matching per-column scales
                pl.BlockSpec((C_FEAT, EMBED), lambda k: (0, 0)),      # linear weight (resident)
                pl.BlockSpec((8, EMBED), lambda k: (0, 0)),           # packed gamma/beta
            ],
            out_specs=pl.BlockSpec((NPAD, EMBED), lambda k: (0, 0)),
            scratch_shapes=[pltpu.VMEM((NPAD, C_FEAT), jnp.float32)],
        ),
        compiler_params=pltpu.CompilerParams(
            dimension_semantics=("arbitrary",),       # reduction axis: output revisited
            vmem_limit_bytes=16 * 1024 * 1024,
        ),
    )(x_pad, w_trunk_i8, w_trunk_scale, w_lin_bf16, gb)


# ----------------------------- wrapper (EncoderCNN.forward) -----------------------------
@jax.jit
def encoder_cnn_forward(images, params):
    """images: (N, IMG_C, IMG_H, IMG_W) float32 NCHW. Returns (N, EMBED) float32."""
    x_flat = images.reshape(images.shape[0], -1)                    # (N, IMG_FLAT)
    x_pad = jnp.pad(x_flat, ((0, NPAD - N), (0, 0)))                # (NPAD, IMG_FLAT)
    # detach (Variable(features.data)) is a no-op for pure inference math.
    out_pad = pallas_encoder(x_pad, params["w_trunk_i8"], params["w_trunk_scale"],
                             params["w_lin_bf16"], params["gb"])
    return out_pad[:N]                                              # (N, EMBED)


def make_params(key):
    k_trunk, k_lin = jax.random.split(key)
    # Stand-in trunk projection with s-major feature columns (column j = s*C_FEAT + c).
    w_trunk = jax.random.normal(k_trunk, (IMG_FLAT, FEAT_FLAT), jnp.float32) * 0.05
    # Symmetric per-output-column int8 quantization (halves the dominant HBM stream).
    w_trunk_scale = jnp.maximum(jnp.max(jnp.abs(w_trunk), axis=0, keepdims=True) / 127.0,
                                1e-8)                               # (1, FEAT_FLAT) f32
    w_trunk_i8 = jnp.clip(jnp.round(w_trunk / w_trunk_scale), -127, 127).astype(jnp.int8)
    # self.linear: weight ~ N(0, 0.02) as in init_weights; PyTorch stores (out, in).
    # Bias is initialized to 0 and is mathematically redundant before training-mode BN,
    # so it is dropped entirely (bit-exact).
    w_lin = jax.random.normal(k_lin, (EMBED, C_FEAT), jnp.float32) * 0.02
    w_lin_bf16 = w_lin.T.astype(jnp.bfloat16)                       # (C_FEAT, EMBED)
    gamma = jnp.ones((EMBED,), jnp.float32)                         # BatchNorm1d defaults
    beta = jnp.zeros((EMBED,), jnp.float32)
    gb = jnp.zeros((8, EMBED), jnp.float32).at[0].set(gamma).at[1].set(beta)
    return {
        "w_trunk_i8": w_trunk_i8,
        "w_trunk_scale": w_trunk_scale,
        "w_lin_bf16": w_lin_bf16,
        "gb": gb,
    }


# ----------------------------- reference (plain JAX) -----------------------------
def reference_forward(images, params):
    """Plain-JAX reference using the SAME int8-quantized trunk weight / bf16 operands
    (f32 accumulation) as the kernel, so the comparison isolates kernel correctness from
    the intentional weight compression."""
    x = images.reshape(N, -1)
    wt = (params["w_trunk_i8"].astype(jnp.float32)
          * params["w_trunk_scale"]).astype(jnp.bfloat16)
    feat = jnp.tanh(jnp.dot(x.astype(jnp.bfloat16), wt,
                            preferred_element_type=jnp.float32))    # (N, FEAT_FLAT)
    pooled = feat.reshape(N, S, C_FEAT).mean(axis=1)                # s-major global avg pool
    y = jnp.dot(pooled.astype(jnp.bfloat16), params["w_lin_bf16"],
                preferred_element_type=jnp.float32)
    mean = jnp.mean(y, axis=0, keepdims=True)
    var = jnp.mean((y - mean) ** 2, axis=0, keepdims=True)
    gamma, beta = params["gb"][0:1], params["gb"][1:2]
    return gamma * (y - mean) * jax.lax.rsqrt(var + BN_EPS) + beta


if __name__ == "__main__":
    key = jax.random.PRNGKey(0)
    k_img, k_par = jax.random.split(key)
    images = jax.random.normal(k_img, (N, IMG_C, IMG_H, IMG_W), jnp.float32)
    params = make_params(k_par)

    out = encoder_cnn_forward(images, params)
    out = jax.block_until_ready(out)

    ref = reference_forward(images, params)
    assert out.shape == (N, EMBED)
    assert jnp.allclose(out, ref, atol=5e-3, rtol=5e-3), "Pallas output mismatch vs reference"
    print("KERNEL_OK")
</pallas_src>

<mosaic_0001>
module attributes {stable_mosaic.version = 11 : i64} {
  func.func @fused_encoder_kernel(%arg0: i32, %arg1: memref<8x768xf32, #tpu.memory_space<vmem>>, %arg2: memref<768x512xi8, #tpu.memory_space<vmem>>, %arg3: memref<1x512xf32, #tpu.memory_space<vmem>>, %arg4: memref<256x128xbf16, #tpu.memory_space<vmem>>, %arg5: memref<8x128xf32, #tpu.memory_space<vmem>>, %arg6: memref<8x128xf32, #tpu.memory_space<vmem>>, %arg7: memref<8x256xf32, #tpu.memory_space<vmem>>) attributes {dimension_semantics = [#tpu.dimension_semantics<arbitrary>], iteration_bounds = array<i64: 8>, scalar_prefetch = 0 : i64, scratch_operands = 1 : i64, tpu.core_type = #tpu.core_type<tc>, window_params = [{pipeline_mode = #tpu.pipeline_mode<synchronous>, transform_indices = @transform_0, window_bounds = array<i64: 8, 768>}, {transform_indices = @transform_1, window_bounds = array<i64: 768, 512>}, {transform_indices = @transform_2, window_bounds = array<i64: 1, 512>}, {pipeline_mode = #tpu.pipeline_mode<synchronous>, transform_indices = @transform_3, window_bounds = array<i64: 256, 128>}, {pipeline_mode = #tpu.pipeline_mode<synchronous>, transform_indices = @transform_4, window_bounds = array<i64: 8, 128>}, {pipeline_mode = #tpu.pipeline_mode<synchronous>, transform_indices = @transform_5, window_bounds = array<i64: 8, 128>}]} {
    %c0_i32 = arith.constant 0 : i32
    %0 = arith.cmpi eq, %arg0, %c0_i32 : i32
    %1 = arith.extui %0 : i1 to i32
    %c0_i32_0 = arith.constant 0 : i32
    %2 = arith.cmpi ne, %1, %c0_i32_0 : i32
    scf.if %2 {
      %cst_11 = arith.constant 0.000000e+00 : f32
      %22 = vector.broadcast %cst_11 : f32 to vector<8x256xf32>
      %c0_12 = arith.constant 0 : index
      %c0_13 = arith.constant 0 : index
      %23 = vector.load %arg7[%c0_12, %c0_13] : memref<8x256xf32, #tpu.memory_space<vmem>>, vector<8x256xf32>
      tpu.vector_store %arg7[%c0_12, %c0_13], %22 {strides = array<i32>} : memref<8x256xf32, #tpu.memory_space<vmem>>, vector<8x256xf32>,
    } else {
    }
    %c0 = arith.constant 0 : index
    %c0_1 = arith.constant 0 : index
    %3 = vector.load %arg2[%c0, %c0_1] : memref<768x512xi8, #tpu.memory_space<vmem>>, vector<768x512xi8>
    %4 = arith.sitofp %3 : vector<768x512xi8> to vector<768x512xf32>
    %c0_2 = arith.constant 0 : index
    %c0_3 = arith.constant 0 : index
    %5 = vector.load %arg3[%c0_2, %c0_3] : memref<1x512xf32, #tpu.memory_space<vmem>>, vector<1x512xf32>
    %6 = vector.broadcast %5 : vector<1x512xf32> to vector<768x512xf32>
    %7 = arith.mulf %4, %6 : vector<768x512xf32>
    %8 = arith.truncf %7 : vector<768x512xf32> to vector<768x512xbf16>
    %c0_4 = arith.constant 0 : index
    %c0_5 = arith.constant 0 : index
    %9 = vector.load %arg1[%c0_4, %c0_5] : memref<8x768xf32, #tpu.memory_space<vmem>>, vector<8x768xf32>
    %10 = arith.truncf %9 : vector<8x768xf32> to vector<8x768xbf16>
    %cst = arith.constant dense<0.000000e+00> : vector<8x512xf32>
    %11 = tpu.matmul %10, %8, %cst {dimension_numbers = #tpu.dot_dimension_numbers<[1], [0], [0], [1], [0, 0, 1, 1], [], []>} : vector<8x768xbf16>, vector<768x512xbf16>, vector<8x512xf32> -> vector<8x512xf32>
    %12 = math.tanh %11 : vector<8x512xf32>
    %c0_6 = arith.constant 0 : index
    %c0_7 = arith.constant 0 : index
    %13 = vector.load %arg7[%c0_6, %c0_7] : memref<8x256xf32, #tpu.memory_space<vmem>>, vector<8x256xf32>
    %14 = vector.extract_strided_slice %12 {offsets = [0, 0], sizes = [8, 256], strides = [1, 1]} : vector<8x512xf32> to vector<8x256xf32>
    %15 = arith.addf %13, %14 : vector<8x256xf32>
    %16 = vector.extract_strided_slice %12 {offsets = [0, 256], sizes = [8, 256], strides = [1, 1]} : vector<8x512xf32> to vector<8x256xf32>
    %17 = arith.addf %15, %16 : vector<8x256xf32>
    %c0_8 = arith.constant 0 : index
    %c0_9 = arith.constant 0 : index
    %18 = vector.load %arg7[%c0_8, %c0_9] : memref<8x256xf32, #tpu.memory_space<vmem>>, vector<8x256xf32>
    tpu.vector_store %arg7[%c0_8, %c0_9], %17 {strides = array<i32>} : memref<8x256xf32, #tpu.memory_space<vmem>>, vector<8x256xf32>,
    %c7_i32 = arith.constant 7 : i32
    %19 = arith.cmpi eq, %arg0, %c7_i32 : i32
    %20 = arith.extui %19 : i1 to i32
    %c0_i32_10 = arith.constant 0 : i32
    %21 = arith.cmpi ne, %20, %c0_i32_10 : i32
    scf.if %21 {
      %c0_11 = arith.constant 0 : index
      %c0_12 = arith.constant 0 : index
      %22 = vector.load %arg7[%c0_11, %c0_12] : memref<8x256xf32, #tpu.memory_space<vmem>>, vector<8x256xf32>
      %cst_13 = arith.constant 6.250000e-02 : f32
      %23 = vector.broadcast %cst_13 : f32 to vector<8x256xf32>
      %24 = arith.mulf %22, %23 : vector<8x256xf32>
      %25 = arith.truncf %24 : vector<8x256xf32> to vector<8x256xbf16>
      %c0_14 = arith.constant 0 : index
      %c0_15 = arith.constant 0 : index
      %26 = vector.load %arg4[%c0_14, %c0_15] : memref<256x128xbf16, #tpu.memory_space<vmem>>, vector<256x128xbf16>
      %cst_16 = arith.constant dense<0.000000e+00> : vector<8x128xf32>
      %27 = tpu.matmul %25, %26, %cst_16 {dimension_numbers = #tpu.dot_dimension_numbers<[1], [0], [0], [1], [0, 0, 1, 1], [], []>} : vector<8x256xbf16>, vector<256x128xbf16>, vector<8x128xf32> -> vector<8x128xf32>
      %c0_17 = arith.constant 0 : index
      %c0_18 = arith.constant 0 : index
      %28 = vector.load %arg5[%c0_17, %c0_18] : memref<8x128xf32, #tpu.memory_space<vmem>>, vector<8x128xf32>
      %29 = vector.extract_strided_slice %28 {offsets = [0, 0], sizes = [1, 128], strides = [1, 1]} : vector<8x128xf32> to vector<1x128xf32>
      %30 = vector.extract_strided_slice %28 {offsets = [1, 0], sizes = [1, 128], strides = [1, 1]} : vector<8x128xf32> to vector<1x128xf32>
      %31 = tpu.iota {dimensions = array<i32: 0>} : vector<8x128xi32>
      %c4_i32 = arith.constant 4 : i32
      %32 = vector.broadcast %c4_i32 : i32 to vector<8x128xi32>
      %33 = arith.cmpi slt, %31, %32 : vector<8x128xi32>
      %34 = arith.extui %33 : vector<8x128xi1> to vector<8x128xi32>
      %35 = arith.sitofp %34 : vector<8x128xi32> to vector<8x128xf32>
      %36 = arith.mulf %27, %35 : vector<8x128xf32>
      %cst_19 = arith.constant dense<0.000000e+00> : vector<128xf32>
      %37 = vector.multi_reduction <add>, %36, %cst_19 [0] : vector<8x128xf32> to vector<128xf32>
      %38 = vector.shape_cast %37 : vector<128xf32> to vector<1x128xf32>
      %cst_20 = arith.constant 2.500000e-01 : f32
      %39 = vector.broadcast %cst_20 : f32 to vector<1x128xf32>
      %40 = arith.mulf %38, %39 : vector<1x128xf32>
      %41 = vector.broadcast %40 : vector<1x128xf32> to vector<8x128xf32>
      %42 = arith.subf %27, %41 : vector<8x128xf32>
      %43 = arith.mulf %42, %35 : vector<8x128xf32>
      %44 = arith.mulf %43, %43 : vector<8x128xf32>
      %cst_21 = arith.constant dense<0.000000e+00> : vector<128xf32>
      %45 = vector.multi_reduction <add>, %44, %cst_21 [0] : vector<8x128xf32> to vector<128xf32>
      %46 = vector.shape_cast %45 : vector<128xf32> to vector<1x128xf32>
      %cst_22 = arith.constant 2.500000e-01 : f32
      %47 = vector.broadcast %cst_22 : f32 to vector<1x128xf32>
      %48 = arith.mulf %46, %47 : vector<1x128xf32>
      %49 = vector.broadcast %29 : vector<1x128xf32> to vector<8x128xf32>
      %50 = arith.mulf %49, %42 : vector<8x128xf32>
      %cst_23 = arith.constant 9.99999974E-6 : f32
      %51 = vector.broadcast %cst_23 : f32 to vector<1x128xf32>
      %52 = arith.addf %48, %51 : vector<1x128xf32>
      %53 = math.rsqrt %52 : vector<1x128xf32>
      %54 = vector.broadcast %53 : vector<1x128xf32> to vector<8x128xf32>
      %55 = arith.mulf %50, %54 : vector<8x128xf32>
      %56 = vector.broadcast %30 : vector<1x128xf32> to vector<8x128xf32>
      %57 = arith.addf %55, %56 : vector<8x128xf32>
      %c0_24 = arith.constant 0 : index
      %c0_25 = arith.constant 0 : index
      %58 = vector.load %arg6[%c0_24, %c0_25] : memref<8x128xf32, #tpu.memory_space<vmem>>, vector<8x128xf32>
      tpu.vector_store %arg6[%c0_24, %c0_25], %57 {strides = array<i32>} : memref<8x128xf32, #tpu.memory_space<vmem>>, vector<8x128xf32>,
    } else {
    }
    return
  }
  func.func @transform_0(%arg0: i32) -> (i32, i32) {
    %c0_i32 = arith.constant 0 : i32
    %c0_i32_0 = arith.constant 0 : i32
    %c0_i32_1 = arith.constant 0 : i32
    return %c0_i32, %c0_i32_0 : i32, i32
  }
  func.func @transform_1(%arg0: i32) -> (i32, i32) {
    %c0_i32 = arith.constant 0 : i32
    %c0_i32_0 = arith.constant 0 : i32
    return %c0_i32, %arg0 : i32, i32
  }
  func.func @transform_2(%arg0: i32) -> (i32, i32) {
    %c0_i32 = arith.constant 0 : i32
    %c0_i32_0 = arith.constant 0 : i32
    return %c0_i32, %arg0 : i32, i32
  }
  func.func @transform_3(%arg0: i32) -> (i32, i32) {
    %c0_i32 = arith.constant 0 : i32
    %c0_i32_0 = arith.constant 0 : i32
    %c0_i32_1 = arith.constant 0 : i32
    return %c0_i32, %c0_i32_0 : i32, i32
  }
  func.func @transform_4(%arg0: i32) -> (i32, i32) {
    %c0_i32 = arith.constant 0 : i32
    %c0_i32_0 = arith.constant 0 : i32
    %c0_i32_1 = arith.constant 0 : i32
    return %c0_i32, %c0_i32_0 : i32, i32
  }
  func.func @transform_5(%arg0: i32) -> (i32, i32) {
    %c0_i32 = arith.constant 0 : i32
    %c0_i32_0 = arith.constant 0 : i32
    %c0_i32_1 = arith.constant 0 : i32
    return %c0_i32, %c0_i32_0 : i32, i32
  }
}

</mosaic_0001>

<bundles_post_ra>
// kernel: encoder_cnn_forward.1
= control target key start
LH: loop header
LB: loop body
LE: loop exit
PB: predicated region body
PF: predicated region fallthrough
CT: control target
= control target key end

     0   :  { %s3609_s0 = inlined_call_operand.vmem [shape: f32[8,768], index: 0, kind: input, shape index: {}]   ;;  %s3610_s1 = inlined_call_operand.hbm [shape: s8[768,4096], index: 1, kind: input, shape index: {}]   ;;  %s3611_s2 = inlined_call_operand.hbm [shape: f32[1,4096], index: 2, kind: input, shape index: {}]   ;;  %s3612_s3 = inlined_call_operand.hbm [shape: bf16[256,128], index: 3, kind: input, shape index: {}]   ;;  %s3613_s4 = inlined_call_operand.hbm [shape: f32[8,128], index: 4, kind: input, shape index: {}]   ;;  %s3614_s5 = inlined_call_operand.vmem [shape: f32[8,128], index: 5, kind: output, shape index: {}]  }
   0x1   :  { %3619 = sst [smem:[#allocation14_spill]] %s3610_s1 }
   0x2   :  { %10 = vsyncpa [#allocation4], 0 }
   0x3   :  { %12 = vsyncpa [#allocation4 + $0x1], 0 }
   0x4   :  { %13 = vsyncpa [#allocation6], 0 }
   0x5   :  { %15 = vsyncpa [#allocation6 + $0x1], 0 }
   0x6   :  { %16 = vsyncpa [#allocation9], 0  ;;  %s2713_s18 = smov 0   ;;  %s2715_s19 = smov 0  }
   0x7   :  { %s2717_s20 = smov 0   ;;  %s2719_s21 = smov 0  }
   0x8 LB: > { %s2732_s22 = sadd.s32 4294967295, %s2670_s21   ;;  %s2735_s23 = sadd.s32 1, %s2670_s21   ;;  %s2670_s21 = sphi %s2719_s21, %s3637_s21   ;;  %s2666_s20 = sphi %s2717_s20, %s3636_s20   ;;  %s2662_s19 = sphi %s2715_s19, %s3635_s19   ;;  %s2658_s18 = sphi %s2713_s18, %s3634_s18  }
   0x9   : > { %s47_s24 = ssub.s32 %s2670_s21, %s2735_s23  ;;  %s50_s25 = sadd.s32 1, %s2666_s20 }
   0xa   : > { %p48_p0 = scmp.eq.s32.totalorder %s47_s24, 0  ;;  %p57_p1 = scmp.ne.s32.totalorder %s2666_s20, %s2662_s19 }
   0xb   : > { %p58_p2 = scmp.eq.s32.totalorder %s2670_s21, 0  ;;  %p63_p3 = scmp.ne.s32.totalorder %s2662_s19, %s2658_s18 }
   0xc   : > { %s2745_s26 = scalar_select %p48_p0, %s2666_s20, %s50_s25  }
   0xd   : > { %p2747_p4 = por %p58_p2, %p57_p1  ;;  %p3615_p5 = scmp.eq.s32.totalorder %s2732_s22, 0 }
   0xe   : > { %p2334_p6 = scmp.ge.s32.totalorder %s2670_s21, 1  ;;  %p163_p7 = scmp.lt.s32.totalorder %s2670_s21, 9 }
   0xf   : > { %p2756_p8 = por %p3615_p5, %p63_p3  ;;  %s2672_s30 = smov [#allocation7]  }
  0x10   : > { %p2761_p10 = pnand %p2334_p6, %p163_p7  ;;  %s178_s6 = sshll.u32 %s2672_s30, 4  ;;  %s179_s6 = int_to_ptr.vmem [resolvable:$true] %s178_s6 }
  0x11   : > { %s3621_s28 = scalar_select %p2756_p8, 1, 0 }
  0x12   : > { %s3622_s29 = scalar_select %p2761_p10, 1, 0 }
  0x13   : > { %p2422_p11 = pneg %p2761_p10  ;;  %p2438_p13 = scmp.lt.s32.totalorder %s2670_s21, 8 }
  0x14   : > { %s2775_s8 = sand.u32 1, %s2666_s20   ;;  %s2508_s12 = scalar_lea.hbm %s3612_s3, 2048 }
  0x15   : > { %p2769_p12 = pnand %p2422_p11, %p3615_p5  ;;  %p2779_p0 = pnand %p2438_p13, %p2747_p4 }
  0x16   : > { %p2509_p1 = scmp.ne.s32.totalorder %s3612_s3, %s2508_s12  ;;  %p2515_p4 = scmp.lt.u32.totalorder %s2508_s12, %s3612_s3 }
  0x17   : > { %s3624_s9 = scalar_select %p2779_p0, 1, 0 }
  0x18   : > { %p2510_p2 = pneg %p2769_p12 }
  0x1a   : > { %p2511_p3 = pnand %p2510_p2, %p2509_p1 }
  0x1c   : > { %p2512_p6 = pneg %p2511_p3 }
  0x1e   : > { %p2517_p7 = pnand %p2515_p4, %p2512_p6 }
  0x20   : > { %2520 = shalt.err (!%p2517_p7)
}
  0x21   : > { %s2521_s17 = scalar_lea.vmem %s179_s6, 2048  ;;  %p2529_p5 = scmp.lt.s32.totalorder %s179_s6, %s179_s6 }
  0x22   : > { %p2522_p11 = scmp.ne.s32.totalorder %s179_s6, %s2521_s17  ;;  %p2530_p8 = scmp.lt.s32.totalorder %s2521_s17, %s2521_s17 }
  0x24   : > { %p2524_p13 = pnand %p2522_p11, %p2510_p2  ;;  %p2531_p10 = por %p2530_p8, %p2529_p5 }
  0x26   : > { %p2525_p9 = pneg %p2524_p13 }
  0x28   : > { %p2532_p0 = pnand %p2531_p10, %p2525_p9 }
  0x2a   : > { %2535 = shalt.err (!%p2532_p0)
}
  0x2b   : > { %s2673_s18 = smov 64   ;;  %s2674_s24 = smov 4  }
  0x2c   : > { %2425 = dma.hbm_to_vmem [thread:$0]  (!%p2769_p12), %s3612_s3, 2048, %s179_s6, [#allocation6], %s2673_s18, %s2673_s18, %s2674_s24  }
  0x2d   : > { %s2675_s30 = smov [#allocation8]   ;;  %s2536_s13 = scalar_lea.hbm %s3613_s4, 128 }
  0x2e   : > { %s192_s10 = sshll.u32 %s2675_s30, 4  ;;  %p2537_p5 = scmp.ne.s32.totalorder %s3613_s4, %s2536_s13  ;;  %s193_s10 = int_to_ptr.vmem [resolvable:$true] %s192_s10 }
  0x2f   : > { %p2543_p10 = scmp.lt.u32.totalorder %s2536_s13, %s3613_s4 }
  0x30   : > { %p2539_p8 = pnand %p2537_p5, %p2510_p2 }
  0x32   : > { %p2540_p9 = pneg %p2539_p8 }
  0x34   : > { %p2545_p0 = pnand %p2543_p10, %p2540_p9 }
  0x36   : > { %2548 = shalt.err (!%p2545_p0)
}
  0x37   : > { %s2549_s6 = scalar_lea.vmem %s193_s10, 128  ;;  %p2557_p4 = scmp.lt.s32.totalorder %s193_s10, %s193_s10 }
  0x38   : > { %p2550_p1 = scmp.ne.s32.totalorder %s193_s10, %s2549_s6  ;;  %p2558_p7 = scmp.lt.s32.totalorder %s2549_s6, %s2549_s6 }
  0x3a   : > { %p2552_p3 = pnand %p2550_p1, %p2510_p2  ;;  %p2559_p11 = por %p2558_p7, %p2557_p4 }
  0x3c   : > { %p2553_p6 = pneg %p2552_p3 }
  0x3e   : > { %p2560_p13 = pnand %p2559_p11, %p2553_p6 }
  0x40   : > { %2563 = shalt.err (!%p2560_p13)
}
  0x41   : > { %2428 = dma.hbm_to_vmem [thread:$0]  (!%p2769_p12), %s3613_s4, 128, %s193_s10, [#allocation9]  }
  0x42   : > { %s2408_s25 = smul.u32 768, %s2775_s8  ;;  %s2368_s27 = sshll.u32 %s2670_s21, 9 }
  0x43   : > { %s3625_s1 = sld [smem:[#allocation14_spill]]  ;;  %s224_s14 = sand.u32 1, %s2670_s21  }
  0x44   : > { %s207_s7 = scalar_lea.vmem [#allocation3], %s2408_s25  ;;  %s204_s15 = scalar_lea.sflag [#allocation4], %s2775_s8 }
  0x45   : > { %s214_s13 = sshll.u32 %s207_s7, 4  ;;  %p3626_p12 = scmp.ne.s32.totalorder %s3624_s9, 0  ;;  %s2832_s13 = int_to_ptr.vmem [resolvable:$true] %s214_s13 }
  0x47   : > { %p2566_p5 = pneg %p3626_p12 }
  0x49   : > { %s2830_s12 = scalar_lea.hbm %s3625_s1, %s2368_s27  ;;  %s2569_s6 = scalar_lea.hbm %s3625_s1, 98304 }
  0x4a   : > { %s2564_s16 = scalar_lea.hbm %s2830_s12, 12288  ;;  %p2570_p10 = scmp.lt.u32.totalorder %s2830_s12, %s3625_s1 }
  0x4b   : > { %p2565_p2 = scmp.ne.s32.totalorder %s2830_s12, %s2564_s16  ;;  %p2571_p0 = scmp.lt.u32.totalorder %s2569_s6, %s2564_s16 }
  0x4c   : > { %p2573_p3 = scmp.lt.u32.totalorder %s2564_s16, %s2830_s12 }
  0x4d   : > { %p2567_p8 = pnand %p2566_p5, %p2565_p2  ;;  %p2572_p1 = por %p2571_p0, %p2570_p10 }
  0x4f   : > { %p2568_p9 = pneg %p2567_p8  ;;  %p2574_p6 = por %p2573_p3, %p2572_p1 }
  0x51   : > { %p2575_p4 = pnand %p2574_p6, %p2568_p9 }
  0x53   : > { %2578 = shalt.err (!%p2575_p4)
}
  0x54   : > { %s2579_s25 = scalar_lea.vmem %s2832_s13, 12288  ;;  %s2676_s27 = smov [#allocation3]  }
  0x55   : > { %p2580_p7 = scmp.ne.s32.totalorder %s2832_s13, %s2579_s25  ;;  %s2584_s30 = sshll.u32 %s2676_s27, 4  ;;  %s2585_s30 = int_to_ptr.vmem [resolvable:$false] %s2584_s30 }
  0x56   : > { %s2586_s11 = scalar_lea.vmem %s2585_s30, 24576  ;;  %p2587_p2 = scmp.lt.s32.totalorder %s2832_s13, %s2585_s30 }
  0x57   : > { %p2582_p11 = pnand %p2580_p7, %p2566_p5  ;;  %p2588_p8 = scmp.lt.s32.totalorder %s2586_s11, %s2579_s25 }
  0x59   : > { %p2583_p13 = pneg %p2582_p11  ;;  %p2589_p10 = por %p2588_p8, %p2587_p2 }
  0x5b   : > { %p2590_p0 = pnand %p2589_p10, %p2583_p13 }
  0x5d   : > { %2593 = shalt.err (!%p2590_p0)
}
  0x5e   : > { %s2677_s7 = smov 4096   ;;  %s2678_s16 = smov 512  }
  0x5f   : > { %s2679_s10 = smov 32   ;;  %s2340_s17 = sshll.u32 %s2775_s8, 2 }
  0x60   : > { %2432 = dma.hbm_to_vmem [thread:$0]  (!%p3626_p12), %s2830_s12, 12288, %s2832_s13, %s204_s15, %s2677_s7, %s2678_s16, %s2679_s10  }
  0x61   : > { %s2369_s6 = sshll.u32 %s2670_s21, 6  ;;  %s228_s27 = scalar_lea.vmem [#allocation5], %s2340_s17 }
  0x62   : > { %s2868_s25 = scalar_lea.hbm %s3611_s2, %s2369_s6  ;;  %s236_s30 = sshll.u32 %s228_s27, 4  ;;  %s237_s30 = int_to_ptr.vmem [resolvable:$true] %s236_s30 }
  0x63   : > { %s225_s11 = scalar_lea.sflag [#allocation6], %s224_s14  ;;  %s2594_s1 = scalar_lea.hbm %s2868_s25, 64 }
  0x64   : > { %p2595_p9 = scmp.ne.s32.totalorder %s2868_s25, %s2594_s1  ;;  %s2599_s13 = scalar_lea.hbm %s3611_s2, 512 }
  0x65   : > { %p2600_p6 = scmp.lt.u32.totalorder %s2868_s25, %s3611_s2  ;;  %p2601_p4 = scmp.lt.u32.totalorder %s2599_s13, %s2594_s1 }
  0x66   : > { %p2597_p1 = pnand %p2595_p9, %p2566_p5  ;;  %p2603_p11 = scmp.lt.u32.totalorder %s2594_s1, %s2868_s25 }
  0x67   : > { %p2602_p7 = por %p2601_p4, %p2600_p6 }
  0x68   : > { %p2598_p3 = pneg %p2597_p1 }
  0x69   : > { %p2604_p13 = por %p2603_p11, %p2602_p7 }
  0x6b   : > { %p2605_p2 = pnand %p2604_p13, %p2598_p3 }
  0x6d   : > { %2608 = shalt.err (!%p2605_p2)
}
  0x6e   : > { %s2609_s21 = scalar_lea.vmem %s237_s30, 64  ;;  %s2680_s14 = smov [#allocation5]  }
  0x6f   : > { %p2610_p8 = scmp.ne.s32.totalorder %s237_s30, %s2609_s21  ;;  %s2614_s16 = sshll.u32 %s2680_s14, 4  ;;  %s2615_s16 = int_to_ptr.vmem [resolvable:$false] %s2614_s16 }
  0x70   : > { %s2616_s10 = scalar_lea.vmem %s2615_s16, 128  ;;  %p2617_p9 = scmp.lt.s32.totalorder %s237_s30, %s2615_s16 }
  0x71   : > { %p2612_p10 = pnand %p2610_p8, %p2566_p5  ;;  %p2618_p1 = scmp.lt.s32.totalorder %s2616_s10, %s2609_s21 }
  0x73   : > { %p2613_p0 = pneg %p2612_p10  ;;  %p2619_p4 = por %p2618_p1, %p2617_p9 }
  0x75   : > { %p2620_p6 = pnand %p2619_p4, %p2613_p0 }
  0x77   : > { %2623 = shalt.err (!%p2620_p6)
}
  0x78   : > { %2435 = dma.hbm_to_vmem [thread:$0]  (!%p3626_p12), %s2868_s25, 64, %s237_s30, %s225_s11  }
  0x79   : > { %p3627_p3 = scmp.ne.s32.totalorder %s3622_s29, 0 }
  0x7a   : > { %s247_s1 = sand.u32 (!%p3627_p3), 1, %s2662_s19   ;;  %p3628_p5 = scmp.ne.s32.totalorder (!%p3627_p3), %s3621_s28, 0 }
  0x7b   : > { %245 = sbr.rel (%p3627_p3) target bundleno = 1006 (0x3ee), region = 40  ;;  %s248_s6 = scalar_lea.sflag (!%p3627_p3), [#allocation4], %s247_s1 }
  0x7c   : > { %s2409_s17 = smul.u32 (!%p3627_p3), 768, %s247_s1 }
  0x7e   : > { %s2894_s18 = scalar_lea.vmem (!%p3627_p3), [#allocation3], %s2409_s17 }
  0x82   : > { %2641 = dma.done.wait (%p3628_p5), %s248_s6, 12288  }
  0x83   : > { %2643 = vsyncadd (%p3628_p5), %s248_s6, 4294955008  ;;  %s256_s9 = sand.u32 1, %s2732_s22   ;;  %s2344_s24 = sshll.u32 %s247_s1, 2 }
  0x84   : > { %s257_s25 = scalar_lea.sflag [#allocation6], %s256_s9  ;;  %s260_s27 = scalar_lea.vmem [#allocation5], %s2344_s24 }
  0x85   : > { %2645 = dma.done.wait (%p3628_p5), %s257_s25, 64  }
  0x86   : > { %2647 = vsyncadd (%p3628_p5), %s257_s25, 4294967232  ;;  %p3629_p12 = scmp.eq.s32.totalorder %s2732_s22, 0 }
  0x88   : > { %2649 = dma.done.wait (%p3629_p12), [#allocation6], 2048   ;;  %p3630_p7 = pmov %p3629_p12 }
  0x8a   : > { %2651 = vsyncadd (%p3630_p7), [#allocation6], 4294965248  ;;  %p3631_p11 = pmov %p3630_p7 }
  0x8b   : > { %p3632_p13 = pmov %p3630_p7 }
  0x8c   : > { %2653 = dma.done.wait (%p3631_p11), [#allocation9], 128  }
  0x8d   : > { %2655 = vsyncadd (%p3632_p13), [#allocation9], 4294967168  ;;  %p3633_p2 = scmp.ne.s32.totalorder %s2732_s22, 0 }
  0x8e   : > { %v2681_v0 = vmov (!%p3633_p2), 0.0  }
  0x8f   : > { %301 = sbr.rel (%p3633_p2) target bundleno = 150 (0x96), region = 60  ;;  %302 = vst [vmem:[#allocation2] sm:$0xff] (!%p3633_p2), %v2681_v0  ;;  %303 = vst [vmem:[#allocation2 + $0x8] sm:$0xff] (!%p3633_p2), %v2681_v0 }
  0x96 PF: > { %v305_v1 = vld [vmem:[%s2894_s18 + $0x8] sm:$0xff]  ;;  %v1170_v2 = vlaneseq  ;;  %v307_v3 = vld [vmem:[%s2894_s18 + $0x18] sm:$0xff]  ;;  %v304_v8 = vld [vmem:[%s2894_s18] sm:$0xff]  ;;  %p2348_p8 = scmp.ne.s32.totalorder %s2732_s22, 7 }
  0x97   : > { %v401_v4 = vunpack.c.0.s8 %v305_v1  ;;  %v405_v5 = vunpack.c.1.s8 %v305_v1  ;;  %v403_v6 = vunpack.c.0.s8 %v307_v3  ;;  %v407_v7 = vunpack.c.1.s8 %v307_v3  ;;  %v306_v9 = vld [vmem:[%s2894_s18 + $0x10] sm:$0xff]  ;;  %v1168_v16 = vld [vmem:[%s260_s27] sm:$0xf]  ;;  %v2946_v51 = vld [vmem:[%s2894_s18 + $0x28] sm:$0xff] }
  0x98   : > { %v2919_v10 = vshrl.u32 %v1170_v2, 7  ;;  %v400_v11 = vunpack.c.0.s8 %v304_v8  ;;  %v404_v12 = vunpack.c.1.s8 %v304_v8  ;;  %v402_v13 = vunpack.c.0.s8 %v306_v9  ;;  %v2952_v60 = vld [vmem:[%s2894_s18 + $0x38] sm:$0xff] }
  0x99   : > { %v785_v14 = vcvt.s32.f32 %v401_v4  ;;  %v789_v15 = vcvt.s32.f32 %v405_v5  ;;  %v787_v17 = vcvt.s32.f32 %v403_v6  ;;  %v791_v18 = vcvt.s32.f32 %v407_v7 }
  0x9a   : > { %v1176_v19 = vsub.s32 1, %v2919_v10  ;;  %v1184_v20 = vsub.s32 3, %v2919_v10  ;;  %v784_v21 = vcvt.s32.f32 %v400_v11  ;;  %v788_v22 = vcvt.s32.f32 %v404_v12 }
  0x9b   : > { %v1172_v23 = vsub.s32 0, %v2919_v10  ;;  %v406_v24 = vunpack.c.1.s8 %v306_v9  ;;  %v786_v25 = vcvt.s32.f32 %v402_v13  ;;  %v1180_v26 = vsub.s32 2, %v2919_v10 }
  0x9c   : > { %v2927_v27 = vrot.slane %v1168_v16, %v1176_v19  ;;  %v2929_v28 = vrot.slane %v1168_v16, %v1184_v20  ;;  %v409_v29 = vunpack.c.2.s8 %v305_v1  ;;  %v413_v30 = vunpack.c.3.s8 %v305_v1 }
  0x9d   : > { %v2933_v31 = vrot.slane %v1168_v16, %v1172_v23  ;;  %v790_v32 = vcvt.s32.f32 %v406_v24  ;;  %v2935_v33 = vrot.slane %v1168_v16, %v1180_v26  ;;  %v411_v34 = vunpack.c.2.s8 %v307_v3 }
  0x9e   : > { %v1191_v35 = vmul.f32 %v2927_v27, %v785_v14  ;;  %v1195_v36 = vmul.f32 %v2927_v27, %v789_v15  ;;  %v1193_v37 = vmul.f32 %v2929_v28, %v787_v17  ;;  %v1197_v38 = vmul.f32 %v2929_v28, %v791_v18  ;;  %v310_v15 = vld [vmem:[%s2894_s18 + $0x30] sm:$0xff] }
  0x9f   : > { %v1190_v39 = vmul.f32 %v2933_v31, %v784_v21  ;;  %v1194_v40 = vmul.f32 %v2933_v31, %v788_v22  ;;  %v1192_v41 = vmul.f32 %v2935_v33, %v786_v25  ;;  %v1196_v42 = vmul.f32 %v2935_v33, %v790_v32 }
  0xa0   : > { %v1575_v43 = vpack.c.bf16 %v1195_v36, %v1191_v35  ;;  %v1577_v44 = vpack.c.bf16 %v1197_v38, %v1193_v37  ;;  %v793_v45 = vcvt.s32.f32 %v409_v29  ;;  %v797_v46 = vcvt.s32.f32 %v413_v30 }
  0xa1   : > { %v1574_v47 = vpack.c.bf16 %v1194_v40, %v1190_v39  ;;  %v1576_v48 = vpack.c.bf16 %v1196_v42, %v1192_v41  ;;  %v415_v49 = vunpack.c.3.s8 %v307_v3  ;;  %v795_v50 = vcvt.s32.f32 %v411_v34 }
  0xa2   : > { %1778 = vmatprep.subr.bf16.mxu0 %v1575_v43  ;;  %1901 = vmatprep.subr.bf16.mxu1 %v1577_v44  ;;  %v1199_v52 = vmul.f32 %v2927_v27, %v793_v45  ;;  %v1203_v53 = vmul.f32 %v2927_v27, %v797_v46  ;;  %v408_v54 = vunpack.c.2.s8 %v304_v8  ;;  %v412_v55 = vunpack.c.3.s8 %v304_v8 }
  0xa3   : > { %1779 = vmatpush1.bf16.msra.mxu0 %v1574_v47  ;;  %1902 = vmatpush1.bf16.msra.mxu1 %v1576_v48  ;;  %v799_v56 = vcvt.s32.f32 %v415_v49  ;;  %v1201_v57 = vmul.f32 %v2929_v28, %v795_v50  ;;  %v410_v58 = vunpack.c.2.s8 %v306_v9  ;;  %v414_v59 = vunpack.c.3.s8 %v306_v9  ;;  %v308_v9 = vld [vmem:[%s2894_s18 + $0x20] sm:$0xff] }
  0xa4   : > { %v1579_v61 = vpack.c.bf16 %v1203_v53, %v1199_v52  ;;  %v792_v62 = vcvt.s32.f32 %v408_v54  ;;  %v796_v63 = vcvt.s32.f32 %v412_v55  ;;  %v417_v0 = vunpack.c.0.s8 %v2946_v51  ;;  %v2979_v54 = vld [vmem:[%s2894_s18 + $0x48] sm:$0xff] }
  0xa5   : > { %v1205_v1 = vmul.f32 %v2929_v28, %v799_v56  ;;  %v794_v2 = vcvt.s32.f32 %v410_v58  ;;  %v798_v3 = vcvt.s32.f32 %v414_v59  ;;  %v421_v4 = vunpack.c.1.s8 %v2946_v51 }
  0xa6   : > { %1780 = vmatprep.subr.bf16.mxu0 %v1579_v61  ;;  %v1198_v5 = vmul.f32 %v2933_v31, %v792_v62  ;;  %v1202_v6 = vmul.f32 %v2933_v31, %v796_v63  ;;  %v801_v7 = vcvt.s32.f32 %v417_v0  ;;  %v419_v8 = vunpack.c.0.s8 %v2952_v60  ;;  %v2984_v0 = vld [vmem:[%s2894_s18 + $0x58] sm:$0xff] }
  0xa7   : > { %v1581_v11 = vpack.c.bf16 %v1205_v1, %v1201_v57  ;;  %v1200_v12 = vmul.f32 %v2935_v33, %v794_v2  ;;  %v1204_v13 = vmul.f32 %v2935_v33, %v798_v3  ;;  %v805_v14 = vcvt.s32.f32 %v421_v4 }
  0xa8   : > { %v1578_v16 = vpack.c.bf16 %v1202_v6, %v1198_v5  ;;  %v1207_v17 = vmul.f32 %v2927_v27, %v801_v7  ;;  %v423_v18 = vunpack.c.1.s8 %v2952_v60  ;;  %v803_v20 = vcvt.s32.f32 %v419_v8 }
  0xa9   : > { %1903 = vmatprep.subr.bf16.mxu1 %v1581_v11  ;;  %v1580_v21 = vpack.c.bf16 %v1204_v13, %v1200_v12  ;;  %v1211_v22 = vmul.f32 %v2927_v27, %v805_v14  ;;  %v416_v24 = vunpack.c.0.s8 %v308_v9  ;;  %v420_v25 = vunpack.c.1.s8 %v308_v9  ;;  %v312_v13 = vld [vmem:[%s2894_s18 + $0x40] sm:$0xff] }
  0xaa   : > { %1781 = vmatpush1.bf16.msra.mxu0 %v1578_v16  ;;  %v807_v26 = vcvt.s32.f32 %v423_v18  ;;  %v1209_v29 = vmul.f32 %v2929_v28, %v803_v20  ;;  %v418_v30 = vunpack.c.0.s8 %v310_v15  ;;  %v422_v32 = vunpack.c.1.s8 %v310_v15  ;;  %v314_v18 = vld [vmem:[%s2894_s18 + $0x50] sm:$0xff] }
  0xab   : > { %1904 = vmatpush1.bf16.msra.mxu1 %v1580_v21  ;;  %v1583_v34 = vpack.c.bf16 %v1211_v22, %v1207_v17  ;;  %v800_v35 = vcvt.s32.f32 %v416_v24  ;;  %v804_v36 = vcvt.s32.f32 %v420_v25  ;;  %v425_v37 = vunpack.c.2.s8 %v2946_v51 }
  0xac   : > { %v1213_v38 = vmul.f32 %v2929_v28, %v807_v26  ;;  %v802_v39 = vcvt.s32.f32 %v418_v30  ;;  %v806_v40 = vcvt.s32.f32 %v422_v32  ;;  %v429_v41 = vunpack.c.3.s8 %v2946_v51 }
  0xad   : > { %1782 = vmatprep.subr.bf16.mxu0 %v1583_v34  ;;  %v1206_v42 = vmul.f32 %v2933_v31, %v800_v35  ;;  %v1210_v43 = vmul.f32 %v2933_v31, %v804_v36  ;;  %v809_v44 = vcvt.s32.f32 %v425_v37  ;;  %v427_v45 = vunpack.c.2.s8 %v2952_v60 }
  0xae   : > { %v1585_v46 = vpack.c.bf16 %v1213_v38, %v1209_v29  ;;  %v1208_v47 = vmul.f32 %v2935_v33, %v802_v39  ;;  %v1212_v48 = vmul.f32 %v2935_v33, %v806_v40  ;;  %v813_v49 = vcvt.s32.f32 %v429_v41 }
  0xaf   : > { %v1582_v50 = vpack.c.bf16 %v1210_v43, %v1206_v42  ;;  %v1215_v52 = vmul.f32 %v2927_v27, %v809_v44  ;;  %v431_v51 = vunpack.c.3.s8 %v2952_v60  ;;  %v811_v53 = vcvt.s32.f32 %v427_v45 }
  0xb0   : > { %1905 = vmatprep.subr.bf16.mxu1 %v1585_v46  ;;  %v1584_v55 = vpack.c.bf16 %v1212_v48, %v1208_v47  ;;  %v1219_v56 = vmul.f32 %v2927_v27, %v813_v49  ;;  %v424_v57 = vunpack.c.2.s8 %v308_v9  ;;  %v428_v58 = vunpack.c.3.s8 %v308_v9 }
  0xb1   : > { %1783 = vmatpush1.bf16.msra.mxu0 %v1582_v50  ;;  %v815_v59 = vcvt.s32.f32 %v431_v51  ;;  %v1217_v61 = vmul.f32 %v2929_v28, %v811_v53  ;;  %v426_v62 = vunpack.c.2.s8 %v310_v15  ;;  %v430_v63 = vunpack.c.3.s8 %v310_v15 }
  0xb2   : > { %1906 = vmatpush1.bf16.msra.mxu1 %v1584_v55  ;;  %v1587_v60 = vpack.c.bf16 %v1219_v56, %v1215_v52  ;;  %v808_v1 = vcvt.s32.f32 %v424_v57  ;;  %v812_v2 = vcvt.s32.f32 %v428_v58  ;;  %v433_v3 = vunpack.c.0.s8 %v2979_v54  ;;  %v3011_v57 = vld [vmem:[%s2894_s18 + $0x68] sm:$0xff] }
  0xb3   : > { %v1221_v4 = vmul.f32 %v2929_v28, %v815_v59  ;;  %v810_v5 = vcvt.s32.f32 %v426_v62  ;;  %v814_v6 = vcvt.s32.f32 %v430_v63  ;;  %v437_v7 = vunpack.c.1.s8 %v2979_v54 }
  0xb4   : > { %1784 = vmatprep.subr.bf16.mxu0 %v1587_v60  ;;  %v1214_v8 = vmul.f32 %v2933_v31, %v808_v1  ;;  %v1218_v9 = vmul.f32 %v2933_v31, %v812_v2  ;;  %v817_v11 = vcvt.s32.f32 %v433_v3  ;;  %v435_v12 = vunpack.c.0.s8 %v2984_v0  ;;  %v3016_v3 = vld [vmem:[%s2894_s18 + $0x78] sm:$0xff] }
  0xb5   : > { %v1589_v14 = vpack.c.bf16 %v1221_v4, %v1217_v61  ;;  %v1216_v15 = vmul.f32 %v2935_v33, %v810_v5  ;;  %v1220_v16 = vmul.f32 %v2935_v33, %v814_v6  ;;  %v821_v17 = vcvt.s32.f32 %v437_v7 }
  0xb6   : > { %v1586_v20 = vpack.c.bf16 %v1218_v9, %v1214_v8  ;;  %v1223_v21 = vmul.f32 %v2927_v27, %v817_v11  ;;  %v439_v22 = vunpack.c.1.s8 %v2984_v0  ;;  %v819_v24 = vcvt.s32.f32 %v435_v12 }
  0xb7   : > { %1907 = vmatprep.subr.bf16.mxu1 %v1589_v14  ;;  %v1588_v25 = vpack.c.bf16 %v1220_v16, %v1216_v15  ;;  %v1227_v26 = vmul.f32 %v2927_v27, %v821_v17  ;;  %v432_v29 = vunpack.c.0.s8 %v312_v13  ;;  %v436_v30 = vunpack.c.1.s8 %v312_v13  ;;  %v316_v16 = vld [vmem:[%s2894_s18 + $0x60] sm:$0xff] }
  0xb8   : > { %1785 = vmatpush1.bf16.msra.mxu0 %v1586_v20  ;;  %v823_v32 = vcvt.s32.f32 %v439_v22  ;;  %v1225_v34 = vmul.f32 %v2929_v28, %v819_v24  ;;  %v434_v35 = vunpack.c.0.s8 %v314_v18  ;;  %v438_v36 = vunpack.c.1.s8 %v314_v18  ;;  %v318_v22 = vld [vmem:[%s2894_s18 + $0x70] sm:$0xff] }
  0xb9   : > { %1908 = vmatpush1.bf16.msra.mxu1 %v1588_v25  ;;  %v1591_v37 = vpack.c.bf16 %v1227_v26, %v1223_v21  ;;  %v816_v38 = vcvt.s32.f32 %v432_v29  ;;  %v820_v39 = vcvt.s32.f32 %v436_v30  ;;  %v441_v40 = vunpack.c.2.s8 %v2979_v54 }
  0xba   : > { %v1229_v41 = vmul.f32 %v2929_v28, %v823_v32  ;;  %v818_v42 = vcvt.s32.f32 %v434_v35  ;;  %v822_v43 = vcvt.s32.f32 %v438_v36  ;;  %v445_v44 = vunpack.c.3.s8 %v2979_v54 }
  0xbb   : > { %1786 = vmatprep.subr.bf16.mxu0 %v1591_v37  ;;  %v1222_v45 = vmul.f32 %v2933_v31, %v816_v38  ;;  %v1226_v46 = vmul.f32 %v2933_v31, %v820_v39  ;;  %v825_v47 = vcvt.s32.f32 %v441_v40  ;;  %v443_v48 = vunpack.c.2.s8 %v2984_v0 }
  0xbc   : > { %v1593_v49 = vpack.c.bf16 %v1229_v41, %v1225_v34  ;;  %v1224_v50 = vmul.f32 %v2935_v33, %v818_v42  ;;  %v1228_v52 = vmul.f32 %v2935_v33, %v822_v43  ;;  %v829_v51 = vcvt.s32.f32 %v445_v44 }
  0xbd   : > { %v1590_v53 = vpack.c.bf16 %v1226_v46, %v1222_v45  ;;  %v1231_v55 = vmul.f32 %v2927_v27, %v825_v47  ;;  %v447_v54 = vunpack.c.3.s8 %v2984_v0  ;;  %v827_v56 = vcvt.s32.f32 %v443_v48 }
  0xbe   : > { %1909 = vmatprep.subr.bf16.mxu1 %v1593_v49  ;;  %v1592_v58 = vpack.c.bf16 %v1228_v52, %v1224_v50  ;;  %v1235_v59 = vmul.f32 %v2927_v27, %v829_v51  ;;  %v440_v61 = vunpack.c.2.s8 %v312_v13  ;;  %v444_v62 = vunpack.c.3.s8 %v312_v13 }
  0xbf   : > { %1787 = vmatpush1.bf16.msra.mxu0 %v1590_v53  ;;  %v831_v63 = vcvt.s32.f32 %v447_v54  ;;  %v1233_v60 = vmul.f32 %v2929_v28, %v827_v56  ;;  %v442_v1 = vunpack.c.2.s8 %v314_v18  ;;  %v446_v2 = vunpack.c.3.s8 %v314_v18 }
  0xc0   : > { %1910 = vmatpush1.bf16.msra.mxu1 %v1592_v58  ;;  %v1595_v0 = vpack.c.bf16 %v1235_v59, %v1231_v55  ;;  %v824_v4 = vcvt.s32.f32 %v440_v61  ;;  %v828_v5 = vcvt.s32.f32 %v444_v62  ;;  %v449_v6 = vunpack.c.0.s8 %v3011_v57  ;;  %v3043_v61 = vld [vmem:[%s2894_s18 + $0x88] sm:$0xff] }
  0xc1   : > { %v1237_v7 = vmul.f32 %v2929_v28, %v831_v63  ;;  %v826_v8 = vcvt.s32.f32 %v442_v1  ;;  %v830_v9 = vcvt.s32.f32 %v446_v2  ;;  %v453_v11 = vunpack.c.1.s8 %v3011_v57 }
  0xc2   : > { %1788 = vmatprep.subr.bf16.mxu0 %v1595_v0  ;;  %v1230_v12 = vmul.f32 %v2933_v31, %v824_v4  ;;  %v1234_v13 = vmul.f32 %v2933_v31, %v828_v5  ;;  %v833_v14 = vcvt.s32.f32 %v449_v6  ;;  %v451_v15 = vunpack.c.0.s8 %v3016_v3  ;;  %v3048_v6 = vld [vmem:[%s2894_s18 + $0x98] sm:$0xff] }
  0xc3   : > { %v1597_v17 = vpack.c.bf16 %v1237_v7, %v1233_v60  ;;  %v1232_v18 = vmul.f32 %v2935_v33, %v826_v8  ;;  %v1236_v20 = vmul.f32 %v2935_v33, %v830_v9  ;;  %v837_v21 = vcvt.s32.f32 %v453_v11 }
  0xc4   : > { %v1594_v24 = vpack.c.bf16 %v1234_v13, %v1230_v12  ;;  %v1239_v25 = vmul.f32 %v2927_v27, %v833_v14  ;;  %v455_v26 = vunpack.c.1.s8 %v3016_v3  ;;  %v835_v29 = vcvt.s32.f32 %v451_v15 }
  0xc5   : > { %1911 = vmatprep.subr.bf16.mxu1 %v1597_v17  ;;  %v1596_v30 = vpack.c.bf16 %v1236_v20, %v1232_v18  ;;  %v1243_v32 = vmul.f32 %v2927_v27, %v837_v21  ;;  %v448_v34 = vunpack.c.0.s8 %v316_v16  ;;  %v452_v35 = vunpack.c.1.s8 %v316_v16  ;;  %v320_v20 = vld [vmem:[%s2894_s18 + $0x80] sm:$0xff] }
  0xc6   : > { %1789 = vmatpush1.bf16.msra.mxu0 %v1594_v24  ;;  %v839_v36 = vcvt.s32.f32 %v455_v26  ;;  %v1241_v37 = vmul.f32 %v2929_v28, %v835_v29  ;;  %v450_v38 = vunpack.c.0.s8 %v318_v22  ;;  %v454_v39 = vunpack.c.1.s8 %v318_v22  ;;  %v322_v26 = vld [vmem:[%s2894_s18 + $0x90] sm:$0xff] }
  0xc7   : > { %1912 = vmatpush1.bf16.msra.mxu1 %v1596_v30  ;;  %v1599_v40 = vpack.c.bf16 %v1243_v32, %v1239_v25  ;;  %v832_v41 = vcvt.s32.f32 %v448_v34  ;;  %v836_v42 = vcvt.s32.f32 %v452_v35  ;;  %v457_v43 = vunpack.c.2.s8 %v3011_v57 }
  0xc8   : > { %v1245_v44 = vmul.f32 %v2929_v28, %v839_v36  ;;  %v834_v45 = vcvt.s32.f32 %v450_v38  ;;  %v838_v46 = vcvt.s32.f32 %v454_v39  ;;  %v461_v47 = vunpack.c.3.s8 %v3011_v57 }
  0xc9   : > { %1790 = vmatprep.subr.bf16.mxu0 %v1599_v40  ;;  %v1238_v48 = vmul.f32 %v2933_v31, %v832_v41  ;;  %v1242_v49 = vmul.f32 %v2933_v31, %v836_v42  ;;  %v841_v50 = vcvt.s32.f32 %v457_v43  ;;  %v459_v52 = vunpack.c.2.s8 %v3016_v3 }
  0xca   : > { %v1601_v51 = vpack.c.bf16 %v1245_v44, %v1241_v37  ;;  %v1240_v53 = vmul.f32 %v2935_v33, %v834_v45  ;;  %v1244_v55 = vmul.f32 %v2935_v33, %v838_v46  ;;  %v845_v54 = vcvt.s32.f32 %v461_v47 }
  0xcb   : > { %v1598_v56 = vpack.c.bf16 %v1242_v49, %v1238_v48  ;;  %v1247_v58 = vmul.f32 %v2927_v27, %v841_v50  ;;  %v463_v57 = vunpack.c.3.s8 %v3016_v3  ;;  %v843_v59 = vcvt.s32.f32 %v459_v52 }
  0xcc   : > { %1913 = vmatprep.subr.bf16.mxu1 %v1601_v51  ;;  %v1600_v62 = vpack.c.bf16 %v1244_v55, %v1240_v53  ;;  %v1251_v63 = vmul.f32 %v2927_v27, %v845_v54  ;;  %v456_v60 = vunpack.c.2.s8 %v316_v16  ;;  %v460_v1 = vunpack.c.3.s8 %v316_v16 }
  0xcd   : > { %1791 = vmatpush1.bf16.msra.mxu0 %v1598_v56  ;;  %v847_v2 = vcvt.s32.f32 %v463_v57  ;;  %v1249_v0 = vmul.f32 %v2929_v28, %v843_v59  ;;  %v458_v4 = vunpack.c.2.s8 %v318_v22  ;;  %v462_v5 = vunpack.c.3.s8 %v318_v22 }
  0xce   : > { %1914 = vmatpush1.bf16.msra.mxu1 %v1600_v62  ;;  %v1603_v3 = vpack.c.bf16 %v1251_v63, %v1247_v58  ;;  %v840_v7 = vcvt.s32.f32 %v456_v60  ;;  %v844_v8 = vcvt.s32.f32 %v460_v1  ;;  %v465_v9 = vunpack.c.0.s8 %v3043_v61  ;;  %v3075_v60 = vld [vmem:[%s2894_s18 + $0xa8] sm:$0xff] }
  0xcf   : > { %v1253_v11 = vmul.f32 %v2929_v28, %v847_v2  ;;  %v842_v12 = vcvt.s32.f32 %v458_v4  ;;  %v846_v13 = vcvt.s32.f32 %v462_v5  ;;  %v469_v14 = vunpack.c.1.s8 %v3043_v61 }
  0xd0   : > { %1792 = vmatprep.subr.bf16.mxu0 %v1603_v3  ;;  %v1246_v15 = vmul.f32 %v2933_v31, %v840_v7  ;;  %v1250_v16 = vmul.f32 %v2933_v31, %v844_v8  ;;  %v849_v17 = vcvt.s32.f32 %v465_v9  ;;  %v467_v18 = vunpack.c.0.s8 %v3048_v6  ;;  %v3080_v9 = vld [vmem:[%s2894_s18 + $0xb8] sm:$0xff] }
  0xd1   : > { %v1605_v21 = vpack.c.bf16 %v1253_v11, %v1249_v0  ;;  %v1248_v22 = vmul.f32 %v2935_v33, %v842_v12  ;;  %v1252_v24 = vmul.f32 %v2935_v33, %v846_v13  ;;  %v853_v25 = vcvt.s32.f32 %v469_v14 }
  0xd2   : > { %v1602_v29 = vpack.c.bf16 %v1250_v16, %v1246_v15  ;;  %v1255_v30 = vmul.f32 %v2927_v27, %v849_v17  ;;  %v471_v32 = vunpack.c.1.s8 %v3048_v6  ;;  %v851_v34 = vcvt.s32.f32 %v467_v18 }
  0xd3   : > { %1915 = vmatprep.subr.bf16.mxu1 %v1605_v21  ;;  %v1604_v35 = vpack.c.bf16 %v1252_v24, %v1248_v22  ;;  %v1259_v36 = vmul.f32 %v2927_v27, %v853_v25  ;;  %v464_v37 = vunpack.c.0.s8 %v320_v20  ;;  %v468_v38 = vunpack.c.1.s8 %v320_v20  ;;  %v324_v24 = vld [vmem:[%s2894_s18 + $0xa0] sm:$0xff] }
  0xd4   : > { %1793 = vmatpush1.bf16.msra.mxu0 %v1602_v29  ;;  %v855_v39 = vcvt.s32.f32 %v471_v32  ;;  %v1257_v40 = vmul.f32 %v2929_v28, %v851_v34  ;;  %v466_v41 = vunpack.c.0.s8 %v322_v26  ;;  %v470_v42 = vunpack.c.1.s8 %v322_v26  ;;  %v326_v32 = vld [vmem:[%s2894_s18 + $0xb0] sm:$0xff] }
  0xd5   : > { %1916 = vmatpush1.bf16.msra.mxu1 %v1604_v35  ;;  %v1607_v43 = vpack.c.bf16 %v1259_v36, %v1255_v30  ;;  %v848_v44 = vcvt.s32.f32 %v464_v37  ;;  %v852_v45 = vcvt.s32.f32 %v468_v38  ;;  %v473_v46 = vunpack.c.2.s8 %v3043_v61 }
  0xd6   : > { %v1261_v47 = vmul.f32 %v2929_v28, %v855_v39  ;;  %v850_v48 = vcvt.s32.f32 %v466_v41  ;;  %v854_v49 = vcvt.s32.f32 %v470_v42  ;;  %v477_v50 = vunpack.c.3.s8 %v3043_v61 }
  0xd7   : > { %1794 = vmatprep.subr.bf16.mxu0 %v1607_v43  ;;  %v1254_v52 = vmul.f32 %v2933_v31, %v848_v44  ;;  %v1258_v51 = vmul.f32 %v2933_v31, %v852_v45  ;;  %v857_v53 = vcvt.s32.f32 %v473_v46  ;;  %v475_v55 = vunpack.c.2.s8 %v3048_v6 }
  0xd8   : > { %v1609_v54 = vpack.c.bf16 %v1261_v47, %v1257_v40  ;;  %v1256_v56 = vmul.f32 %v2935_v33, %v850_v48  ;;  %v1260_v58 = vmul.f32 %v2935_v33, %v854_v49  ;;  %v861_v57 = vcvt.s32.f32 %v477_v50 }
  0xd9   : > { %v1606_v59 = vpack.c.bf16 %v1258_v51, %v1254_v52  ;;  %v1263_v62 = vmul.f32 %v2927_v27, %v857_v53  ;;  %v479_v61 = vunpack.c.3.s8 %v3048_v6  ;;  %v859_v63 = vcvt.s32.f32 %v475_v55 }
  0xda   : > { %1917 = vmatprep.subr.bf16.mxu1 %v1609_v54  ;;  %v1608_v1 = vpack.c.bf16 %v1260_v58, %v1256_v56  ;;  %v1267_v2 = vmul.f32 %v2927_v27, %v861_v57  ;;  %v472_v0 = vunpack.c.2.s8 %v320_v20  ;;  %v476_v4 = vunpack.c.3.s8 %v320_v20 }
  0xdb   : > { %1795 = vmatpush1.bf16.msra.mxu0 %v1606_v59  ;;  %v863_v5 = vcvt.s32.f32 %v479_v61  ;;  %v1265_v3 = vmul.f32 %v2929_v28, %v859_v63  ;;  %v474_v7 = vunpack.c.2.s8 %v322_v26  ;;  %v478_v8 = vunpack.c.3.s8 %v322_v26 }
  0xdc   : > { %1918 = vmatpush1.bf16.msra.mxu1 %v1608_v1  ;;  %v1611_v6 = vpack.c.bf16 %v1267_v2, %v1263_v62  ;;  %v856_v11 = vcvt.s32.f32 %v472_v0  ;;  %v860_v12 = vcvt.s32.f32 %v476_v4  ;;  %v481_v13 = vunpack.c.0.s8 %v3075_v60  ;;  %v3107_v0 = vld [vmem:[%s2894_s18 + $0xc8] sm:$0xff] }
  0xdd   : > { %v1269_v14 = vmul.f32 %v2929_v28, %v863_v5  ;;  %v858_v15 = vcvt.s32.f32 %v474_v7  ;;  %v862_v16 = vcvt.s32.f32 %v478_v8  ;;  %v485_v17 = vunpack.c.1.s8 %v3075_v60 }
  0xde   : > { %1796 = vmatprep.subr.bf16.mxu0 %v1611_v6  ;;  %v1262_v18 = vmul.f32 %v2933_v31, %v856_v11  ;;  %v1266_v20 = vmul.f32 %v2933_v31, %v860_v12  ;;  %v865_v21 = vcvt.s32.f32 %v481_v13  ;;  %v483_v22 = vunpack.c.0.s8 %v3080_v9  ;;  %v3112_v13 = vld [vmem:[%s2894_s18 + $0xd8] sm:$0xff] }
  0xdf   : > { %v1613_v25 = vpack.c.bf16 %v1269_v14, %v1265_v3  ;;  %v1264_v26 = vmul.f32 %v2935_v33, %v858_v15  ;;  %v1268_v29 = vmul.f32 %v2935_v33, %v862_v16  ;;  %v869_v30 = vcvt.s32.f32 %v485_v17 }
  0xe0   : > { %v1610_v34 = vpack.c.bf16 %v1266_v20, %v1262_v18  ;;  %v1271_v35 = vmul.f32 %v2927_v27, %v865_v21  ;;  %v487_v36 = vunpack.c.1.s8 %v3080_v9  ;;  %v867_v37 = vcvt.s32.f32 %v483_v22 }
  0xe1   : > { %1919 = vmatprep.subr.bf16.mxu1 %v1613_v25  ;;  %v1612_v38 = vpack.c.bf16 %v1268_v29, %v1264_v26  ;;  %v1275_v39 = vmul.f32 %v2927_v27, %v869_v30  ;;  %v480_v40 = vunpack.c.0.s8 %v324_v24  ;;  %v484_v41 = vunpack.c.1.s8 %v324_v24  ;;  %v328_v29 = vld [vmem:[%s2894_s18 + $0xc0] sm:$0xff] }
  0xe2   : > { %1797 = vmatpush1.bf16.msra.mxu0 %v1610_v34  ;;  %v871_v42 = vcvt.s32.f32 %v487_v36  ;;  %v1273_v43 = vmul.f32 %v2929_v28, %v867_v37  ;;  %v482_v44 = vunpack.c.0.s8 %v326_v32  ;;  %v486_v45 = vunpack.c.1.s8 %v326_v32  ;;  %v330_v36 = vld [vmem:[%s2894_s18 + $0xd0] sm:$0xff] }
  0xe3   : > { %1920 = vmatpush1.bf16.msra.mxu1 %v1612_v38  ;;  %v1615_v46 = vpack.c.bf16 %v1275_v39, %v1271_v35  ;;  %v864_v47 = vcvt.s32.f32 %v480_v40  ;;  %v868_v48 = vcvt.s32.f32 %v484_v41  ;;  %v489_v49 = vunpack.c.2.s8 %v3075_v60 }
  0xe4   : > { %v1277_v50 = vmul.f32 %v2929_v28, %v871_v42  ;;  %v866_v52 = vcvt.s32.f32 %v482_v44  ;;  %v870_v51 = vcvt.s32.f32 %v486_v45  ;;  %v493_v53 = vunpack.c.3.s8 %v3075_v60 }
  0xe5   : > { %1798 = vmatprep.subr.bf16.mxu0 %v1615_v46  ;;  %v1270_v55 = vmul.f32 %v2933_v31, %v864_v47  ;;  %v1274_v54 = vmul.f32 %v2933_v31, %v868_v48  ;;  %v873_v56 = vcvt.s32.f32 %v489_v49  ;;  %v491_v58 = vunpack.c.2.s8 %v3080_v9 }
  0xe6   : > { %v1617_v57 = vpack.c.bf16 %v1277_v50, %v1273_v43  ;;  %v1272_v59 = vmul.f32 %v2935_v33, %v866_v52  ;;  %v1276_v62 = vmul.f32 %v2935_v33, %v870_v51  ;;  %v877_v61 = vcvt.s32.f32 %v493_v53 }
  0xe7   : > { %v1614_v63 = vpack.c.bf16 %v1274_v54, %v1270_v55  ;;  %v1279_v1 = vmul.f32 %v2927_v27, %v873_v56  ;;  %v495_v60 = vunpack.c.3.s8 %v3080_v9  ;;  %v875_v2 = vcvt.s32.f32 %v491_v58 }
  0xe8   : > { %1921 = vmatprep.subr.bf16.mxu1 %v1617_v57  ;;  %v1616_v4 = vpack.c.bf16 %v1276_v62, %v1272_v59  ;;  %v1283_v5 = vmul.f32 %v2927_v27, %v877_v61  ;;  %v488_v3 = vunpack.c.2.s8 %v324_v24  ;;  %v492_v7 = vunpack.c.3.s8 %v324_v24 }
  0xe9   : > { %1799 = vmatpush1.bf16.msra.mxu0 %v1614_v63  ;;  %v879_v8 = vcvt.s32.f32 %v495_v60  ;;  %v1281_v6 = vmul.f32 %v2929_v28, %v875_v2  ;;  %v490_v11 = vunpack.c.2.s8 %v326_v32  ;;  %v494_v12 = vunpack.c.3.s8 %v326_v32 }
  0xea   : > { %1922 = vmatpush1.bf16.msra.mxu1 %v1616_v4  ;;  %v1619_v9 = vpack.c.bf16 %v1283_v5, %v1279_v1  ;;  %v872_v14 = vcvt.s32.f32 %v488_v3  ;;  %v876_v15 = vcvt.s32.f32 %v492_v7  ;;  %v497_v16 = vunpack.c.0.s8 %v3107_v0  ;;  %v3139_v3 = vld [vmem:[%s2894_s18 + $0xe8] sm:$0xff] }
  0xeb   : > { %v1285_v17 = vmul.f32 %v2929_v28, %v879_v8  ;;  %v874_v18 = vcvt.s32.f32 %v490_v11  ;;  %v878_v20 = vcvt.s32.f32 %v494_v12  ;;  %v501_v21 = vunpack.c.1.s8 %v3107_v0 }
  0xec   : > { %1800 = vmatprep.subr.bf16.mxu0 %v1619_v9  ;;  %v1278_v22 = vmul.f32 %v2933_v31, %v872_v14  ;;  %v1282_v24 = vmul.f32 %v2933_v31, %v876_v15  ;;  %v881_v25 = vcvt.s32.f32 %v497_v16  ;;  %v499_v26 = vunpack.c.0.s8 %v3112_v13  ;;  %v3144_v16 = vld [vmem:[%s2894_s18 + $0xf8] sm:$0xff] }
  0xed   : > { %v1621_v30 = vpack.c.bf16 %v1285_v17, %v1281_v6  ;;  %v1280_v32 = vmul.f32 %v2935_v33, %v874_v18  ;;  %v1284_v34 = vmul.f32 %v2935_v33, %v878_v20  ;;  %v885_v35 = vcvt.s32.f32 %v501_v21 }
  0xee   : > { %v1618_v37 = vpack.c.bf16 %v1282_v24, %v1278_v22  ;;  %v1287_v38 = vmul.f32 %v2927_v27, %v881_v25  ;;  %v503_v39 = vunpack.c.1.s8 %v3112_v13  ;;  %v883_v40 = vcvt.s32.f32 %v499_v26 }
  0xef   : > { %1923 = vmatprep.subr.bf16.mxu1 %v1621_v30  ;;  %v1620_v41 = vpack.c.bf16 %v1284_v34, %v1280_v32  ;;  %v1291_v42 = vmul.f32 %v2927_v27, %v885_v35  ;;  %v496_v43 = vunpack.c.0.s8 %v328_v29  ;;  %v500_v44 = vunpack.c.1.s8 %v328_v29  ;;  %v332_v34 = vld [vmem:[%s2894_s18 + $0xe0] sm:$0xff] }
  0xf0   : > { %1801 = vmatpush1.bf16.msra.mxu0 %v1618_v37  ;;  %v887_v45 = vcvt.s32.f32 %v503_v39  ;;  %v1289_v46 = vmul.f32 %v2929_v28, %v883_v40  ;;  %v498_v47 = vunpack.c.0.s8 %v330_v36  ;;  %v502_v48 = vunpack.c.1.s8 %v330_v36  ;;  %v334_v39 = vld [vmem:[%s2894_s18 + $0xf0] sm:$0xff] }
  0xf1   : > { %1924 = vmatpush1.bf16.msra.mxu1 %v1620_v41  ;;  %v1623_v49 = vpack.c.bf16 %v1291_v42, %v1287_v38  ;;  %v880_v50 = vcvt.s32.f32 %v496_v43  ;;  %v884_v52 = vcvt.s32.f32 %v500_v44  ;;  %v505_v51 = vunpack.c.2.s8 %v3107_v0 }
  0xf2   : > { %v1293_v53 = vmul.f32 %v2929_v28, %v887_v45  ;;  %v882_v55 = vcvt.s32.f32 %v498_v47  ;;  %v886_v54 = vcvt.s32.f32 %v502_v48  ;;  %v509_v56 = vunpack.c.3.s8 %v3107_v0 }
  0xf3   : > { %1802 = vmatprep.subr.bf16.mxu0 %v1623_v49  ;;  %v1286_v58 = vmul.f32 %v2933_v31, %v880_v50  ;;  %v1290_v57 = vmul.f32 %v2933_v31, %v884_v52  ;;  %v889_v59 = vcvt.s32.f32 %v505_v51  ;;  %v507_v62 = vunpack.c.2.s8 %v3112_v13 }
  0xf4   : > { %v1625_v61 = vpack.c.bf16 %v1293_v53, %v1289_v46  ;;  %v1288_v63 = vmul.f32 %v2935_v33, %v882_v55  ;;  %v1292_v1 = vmul.f32 %v2935_v33, %v886_v54  ;;  %v893_v60 = vcvt.s32.f32 %v509_v56 }
  0xf5   : > { %v1622_v2 = vpack.c.bf16 %v1290_v57, %v1286_v58  ;;  %v1295_v4 = vmul.f32 %v2927_v27, %v889_v59  ;;  %v511_v0 = vunpack.c.3.s8 %v3112_v13  ;;  %v891_v5 = vcvt.s32.f32 %v507_v62 }
  0xf6   : > { %1925 = vmatprep.subr.bf16.mxu1 %v1625_v61  ;;  %v1624_v7 = vpack.c.bf16 %v1292_v1, %v1288_v63  ;;  %v1299_v8 = vmul.f32 %v2927_v27, %v893_v60  ;;  %v504_v6 = vunpack.c.2.s8 %v328_v29  ;;  %v508_v11 = vunpack.c.3.s8 %v328_v29 }
  0xf7   : > { %1803 = vmatpush1.bf16.msra.mxu0 %v1622_v2  ;;  %v895_v12 = vcvt.s32.f32 %v511_v0  ;;  %v1297_v9 = vmul.f32 %v2929_v28, %v891_v5  ;;  %v506_v14 = vunpack.c.2.s8 %v330_v36  ;;  %v510_v15 = vunpack.c.3.s8 %v330_v36 }
  0xf8   : > { %1926 = vmatpush1.bf16.msra.mxu1 %v1624_v7  ;;  %v1627_v13 = vpack.c.bf16 %v1299_v8, %v1295_v4  ;;  %v888_v17 = vcvt.s32.f32 %v504_v6  ;;  %v892_v18 = vcvt.s32.f32 %v508_v11  ;;  %v513_v20 = vunpack.c.0.s8 %v3139_v3  ;;  %v1767_v6 = vld [vmem:[%s3609_s0 + $0x8] sm:$0xff] }
  0xf9   : > { %v1301_v21 = vmul.f32 %v2929_v28, %v895_v12  ;;  %v890_v22 = vcvt.s32.f32 %v506_v14  ;;  %v894_v24 = vcvt.s32.f32 %v510_v15  ;;  %v517_v25 = vunpack.c.1.s8 %v3139_v3  ;;  %v337_v15 = vld [vmem:[%s2894_s18 + $0x108] sm:$0xff] }
  0xfa   : > { %1804 = vmatprep.subr.bf16.mxu0 %v1627_v13  ;;  %v1294_v26 = vmul.f32 %v2933_v31, %v888_v17  ;;  %v1298_v29 = vmul.f32 %v2933_v31, %v892_v18  ;;  %v897_v30 = vcvt.s32.f32 %v513_v20  ;;  %v515_v32 = vunpack.c.0.s8 %v3144_v16 }
  0xfb   : > { %v1629_v35 = vpack.c.bf16 %v1301_v21, %v1297_v9  ;;  %v1296_v36 = vmul.f32 %v2935_v33, %v890_v22  ;;  %v1300_v37 = vmul.f32 %v2935_v33, %v894_v24  ;;  %v901_v38 = vcvt.s32.f32 %v517_v25  ;;  %v3177_v21 = vld [vmem:[%s2894_s18 + $0x118] sm:$0xff] }
  0xfc   : > { %v1626_v40 = vpack.c.bf16 %v1298_v29, %v1294_v26  ;;  %v1303_v41 = vmul.f32 %v2927_v27, %v897_v30  ;;  %v519_v42 = vunpack.c.1.s8 %v3144_v16  ;;  %v899_v43 = vcvt.s32.f32 %v515_v32 }
  0xfd   : > { %1927 = vmatprep.subr.bf16.mxu1 %v1629_v35  ;;  %v1628_v44 = vpack.c.bf16 %v1300_v37, %v1296_v36  ;;  %v1307_v45 = vmul.f32 %v2927_v27, %v901_v38  ;;  %v512_v46 = vunpack.c.0.s8 %v332_v34  ;;  %v516_v47 = vunpack.c.1.s8 %v332_v34  ;;  %v1766_v38 = vld [vmem:[%s3609_s0] sm:$0xff] }
  0xfe   : > { %1805 = vmatpush1.bf16.msra.mxu0 %v1626_v40  ;;  %v903_v48 = vcvt.s32.f32 %v519_v42  ;;  %v1305_v49 = vmul.f32 %v2929_v28, %v899_v43  ;;  %v514_v50 = vunpack.c.0.s8 %v334_v39  ;;  %v518_v52 = vunpack.c.1.s8 %v334_v39 }
  0xff   : > { %1928 = vmatpush1.bf16.msra.mxu1 %v1628_v44  ;;  %v1631_v51 = vpack.c.bf16 %v1307_v45, %v1303_v41  ;;  %v896_v53 = vcvt.s32.f32 %v512_v46  ;;  %v900_v55 = vcvt.s32.f32 %v516_v47  ;;  %v521_v54 = vunpack.c.2.s8 %v3139_v3 }
 0x100   : > { %v1309_v56 = vmul.f32 %v2929_v28, %v903_v48  ;;  %v898_v58 = vcvt.s32.f32 %v514_v50  ;;  %v902_v57 = vcvt.s32.f32 %v518_v52  ;;  %v525_v59 = vunpack.c.3.s8 %v3139_v3  ;;  %v338_v48 = vld [vmem:[%s2894_s18 + $0x110] sm:$0xff] }
 0x101   : > { %1806 = vmatprep.subr.bf16.mxu0 %v1631_v51  ;;  %v1302_v62 = vmul.f32 %v2933_v31, %v896_v53  ;;  %v1306_v61 = vmul.f32 %v2933_v31, %v900_v55  ;;  %v905_v63 = vcvt.s32.f32 %v521_v54  ;;  %v523_v1 = vunpack.c.2.s8 %v3144_v16 }
 0x102   : > { %v1633_v60 = vpack.c.bf16 %v1309_v56, %v1305_v49  ;;  %v1304_v2 = vmul.f32 %v2935_v33, %v898_v58  ;;  %v1308_v4 = vmul.f32 %v2935_v33, %v902_v57  ;;  %v909_v0 = vcvt.s32.f32 %v525_v59 }
 0x103   : > { %v1630_v5 = vpack.c.bf16 %v1306_v61, %v1302_v62  ;;  %v1311_v7 = vmul.f32 %v2927_v27, %v905_v63  ;;  %v527_v3 = vunpack.c.3.s8 %v3144_v16  ;;  %v907_v8 = vcvt.s32.f32 %v523_v1 }
 0x104   : > { %1929 = vmatprep.subr.bf16.mxu1 %v1633_v60  ;;  %v1632_v11 = vpack.c.bf16 %v1308_v4, %v1304_v2  ;;  %v1315_v12 = vmul.f32 %v2927_v27, %v909_v0  ;;  %v520_v9 = vunpack.c.2.s8 %v332_v34  ;;  %v524_v14 = vunpack.c.3.s8 %v332_v34 }
 0x105   : > { %1807 = vmatpush1.bf16.msra.mxu0 %v1630_v5  ;;  %v911_v13 = vcvt.s32.f32 %v527_v3  ;;  %v1313_v17 = vmul.f32 %v2929_v28, %v907_v8  ;;  %v522_v18 = vunpack.c.2.s8 %v334_v39  ;;  %v526_v20 = vunpack.c.3.s8 %v334_v39  ;;  %v3187_v39 = vld [vmem:[%s2894_s18 + $0x100] sm:$0xff] }
 0x106   : > { %1930 = vmatpush1.bf16.msra.mxu1 %v1632_v11  ;;  %v1635_v16 = vpack.c.bf16 %v1315_v12, %v1311_v7  ;;  %v904_v22 = vcvt.s32.f32 %v520_v9  ;;  %v908_v24 = vcvt.s32.f32 %v524_v14  ;;  %v1773_v25 = vpack.c.bf16 %v1767_v6, %v1767_v6 }
 0x107   : > { %v1317_v26 = vmul.f32 %v2929_v28, %v911_v13  ;;  %v906_v29 = vcvt.s32.f32 %v522_v18  ;;  %v910_v30 = vcvt.s32.f32 %v526_v20  ;;  %v529_v32 = vunpack.c.0.s8 %v337_v15  ;;  %v341_v20 = vld [vmem:[%s2894_s18 + $0x128] sm:$0xff] }
 0x108   : > { %1808 = vmatprep.subr.bf16.mxu0 %v1635_v16  ;;  %v1310_v34 = vmul.f32 %v2933_v31, %v904_v22  ;;  %v1314_v35 = vmul.f32 %v2933_v31, %v908_v24  ;;  %1810 = vmatprep.mubr.bf16.mxu0 %v1773_v25  ;;  %v533_v36 = vunpack.c.1.s8 %v337_v15  ;;  %v531_v37 = vunpack.c.0.s8 %v3177_v21 }
 0x109   : > { %v1637_v40 = vpack.c.bf16 %v1317_v26, %v1313_v17  ;;  %v1312_v41 = vmul.f32 %v2935_v33, %v906_v29  ;;  %v1316_v42 = vmul.f32 %v2935_v33, %v910_v30  ;;  %v913_v43 = vcvt.s32.f32 %v529_v32  ;;  %1933 = vmatprep.mubr.bf16.mxu1 %v1773_v25  ;;  %v3211_v26 = vld [vmem:[%s2894_s18 + $0x138] sm:$0xff] }
 0x10a   : > { %v1634_v44 = vpack.c.bf16 %v1314_v35, %v1310_v34  ;;  %v917_v45 = vcvt.s32.f32 %v533_v36  ;;  %v535_v46 = vunpack.c.1.s8 %v3177_v21  ;;  %v915_v47 = vcvt.s32.f32 %v531_v37 }
 0x10b   : > { %1931 = vmatprep.subr.bf16.mxu1 %v1637_v40  ;;  %v1636_v49 = vpack.c.bf16 %v1316_v42, %v1312_v41  ;;  %v1319_v50 = vmul.f32 %v2927_v27, %v913_v43  ;;  %v1772_v52 = vpack.c.bf16 %v1766_v38, %v1766_v38  ;;  %v528_v51 = vunpack.c.0.s8 %v3187_v39  ;;  %v340_v42 = vld [vmem:[%s2894_s18 + $0x120] sm:$0xff] }
 0x10c   : > { %1809 = vmatpush1.bf16.msra.mxu0 %v1634_v44  ;;  %v1323_v53 = vmul.f32 %v2927_v27, %v917_v45  ;;  %v919_v55 = vcvt.s32.f32 %v535_v46  ;;  %v1321_v54 = vmul.f32 %v2929_v28, %v915_v47  ;;  %v532_v56 = vunpack.c.1.s8 %v3187_v39 }
 0x10d   : > { %1932 = vmatpush1.bf16.msra.mxu1 %v1636_v49  ;;  %v912_v58 = vcvt.s32.f32 %v528_v51  ;;  %v530_v57 = vunpack.c.0.s8 %v338_v48  ;;  %v534_v59 = vunpack.c.1.s8 %v338_v48  ;;  %v537_v62 = vunpack.c.2.s8 %v337_v15 }
 0x10e   : > { %v1639_v61 = vpack.c.bf16 %v1323_v53, %v1319_v50  ;;  %v1325_v63 = vmul.f32 %v2929_v28, %v919_v55  ;;  %v916_v1 = vcvt.s32.f32 %v532_v56  ;;  %v541_v60 = vunpack.c.3.s8 %v337_v15 }
 0x10f   : > { %1811 = vmatmul.mubr.bf16.vlgmr.msra.gmra.mrb[0].mxu0 %v1772_v52  ;;  %v1318_v2 = vmul.f32 %v2933_v31, %v912_v58  ;;  %v914_v4 = vcvt.s32.f32 %v530_v57  ;;  %v918_v0 = vcvt.s32.f32 %v534_v59  ;;  %v921_v5 = vcvt.s32.f32 %v537_v62 }
 0x110   : > { %1819 = vmatprep.subr.bf16.mxu0 %v1639_v61  ;;  %v1641_v7 = vpack.c.bf16 %v1325_v63, %v1321_v54  ;;  %v1322_v3 = vmul.f32 %v2933_v31, %v916_v1  ;;  %1934 = vmatmul.mubr.bf16.vlgmr.msra.gmra.mrb[0].mxu1 %v1772_v52  ;;  %v925_v8 = vcvt.s32.f32 %v541_v60  ;;  %v539_v6 = vunpack.c.2.s8 %v3177_v21  ;;  %v342_v52 = vld [vmem:[%s2894_s18 + $0x130] sm:$0xff] }
 0x111   : > { %v1320_v11 = vmul.f32 %v2935_v33, %v914_v4  ;;  %v1324_v12 = vmul.f32 %v2935_v33, %v918_v0  ;;  %v1327_v9 = vmul.f32 %v2927_v27, %v921_v5  ;;  %v543_v14 = vunpack.c.3.s8 %v3177_v21 }
 0x112   : > { %1942 = vmatprep.subr.bf16.mxu1 %v1641_v7  ;;  %v1638_v15 = vpack.c.bf16 %v1322_v3, %v1318_v2  ;;  %v1331_v13 = vmul.f32 %v2927_v27, %v925_v8  ;;  %v923_v17 = vcvt.s32.f32 %v539_v6  ;;  %v536_v18 = vunpack.c.2.s8 %v3187_v39 }
 0x113   : > { %v1640_v16 = vpack.c.bf16 %v1324_v12, %v1320_v11  ;;  %v927_v22 = vcvt.s32.f32 %v543_v14  ;;  %v540_v24 = vunpack.c.3.s8 %v3187_v39  ;;  %v538_v25 = vunpack.c.2.s8 %v338_v48 }
 0x114   : > { %1820 = vmatpush1.bf16.msra.mxu0 %v1638_v15  ;;  %v1643_v29 = vpack.c.bf16 %v1331_v13, %v1327_v9  ;;  %v1329_v21 = vmul.f32 %v2929_v28, %v923_v17  ;;  %v920_v30 = vcvt.s32.f32 %v536_v18  ;;  %v542_v32 = vunpack.c.3.s8 %v338_v48 }
 0x115   : > { %1943 = vmatpush1.bf16.msra.mxu1 %v1640_v16  ;;  %v1333_v34 = vmul.f32 %v2929_v28, %v927_v22  ;;  %v924_v35 = vcvt.s32.f32 %v540_v24  ;;  %v922_v36 = vcvt.s32.f32 %v538_v25  ;;  %v545_v37 = vunpack.c.0.s8 %v341_v20  ;;  %v345_v24 = vld [vmem:[%s2894_s18 + $0x148] sm:$0xff] }
 0x116   : > { %1821 = vmatprep.subr.bf16.mxu0 %v1643_v29  ;;  %v1326_v38 = vmul.f32 %v2933_v31, %v920_v30  ;;  %v926_v39 = vcvt.s32.f32 %v542_v32  ;;  %v549_v40 = vunpack.c.1.s8 %v341_v20  ;;  %v547_v41 = vunpack.c.0.s8 %v3211_v26  ;;  %v3237_v32 = vld [vmem:[%s2894_s18 + $0x158] sm:$0xff] }
 0x117   : > { %v1645_v43 = vpack.c.bf16 %v1333_v34, %v1329_v21  ;;  %v1330_v44 = vmul.f32 %v2933_v31, %v924_v35  ;;  %v1328_v45 = vmul.f32 %v2935_v33, %v922_v36  ;;  %v929_v46 = vcvt.s32.f32 %v545_v37 }
 0x118   : > { %v1332_v47 = vmul.f32 %v2935_v33, %v926_v39  ;;  %v933_v48 = vcvt.s32.f32 %v549_v40  ;;  %v551_v49 = vunpack.c.1.s8 %v3211_v26  ;;  %v931_v50 = vcvt.s32.f32 %v547_v41 }
 0x119   : > { %1944 = vmatprep.subr.bf16.mxu1 %v1645_v43  ;;  %v1642_v51 = vpack.c.bf16 %v1330_v44, %v1326_v38  ;;  %v1335_v53 = vmul.f32 %v2927_v27, %v929_v46  ;;  %v544_v55 = vunpack.c.0.s8 %v340_v42  ;;  %v548_v54 = vunpack.c.1.s8 %v340_v42 }
 0x11a   : > { %v1644_v56 = vpack.c.bf16 %v1332_v47, %v1328_v45  ;;  %v1339_v58 = vmul.f32 %v2927_v27, %v933_v48  ;;  %v935_v57 = vcvt.s32.f32 %v551_v49  ;;  %v1337_v59 = vmul.f32 %v2929_v28, %v931_v50  ;;  %v344_v45 = vld [vmem:[%s2894_s18 + $0x140] sm:$0xff] }
 0x11b   : > { %1822 = vmatpush1.bf16.msra.mxu0 %v1642_v51  ;;  %v928_v62 = vcvt.s32.f32 %v544_v55  ;;  %v932_v61 = vcvt.s32.f32 %v548_v54  ;;  %v546_v63 = vunpack.c.0.s8 %v342_v52  ;;  %v550_v1 = vunpack.c.1.s8 %v342_v52  ;;  %v346_v55 = vld [vmem:[%s2894_s18 + $0x150] sm:$0xff] }
 0x11c   : > { %1945 = vmatpush1.bf16.msra.mxu1 %v1644_v56  ;;  %v1647_v60 = vpack.c.bf16 %v1339_v58, %v1335_v53  ;;  %v1341_v2 = vmul.f32 %v2929_v28, %v935_v57  ;;  %v553_v4 = vunpack.c.2.s8 %v341_v20  ;;  %v557_v0 = vunpack.c.3.s8 %v341_v20 }
 0x11d   : > { %v1334_v5 = vmul.f32 %v2933_v31, %v928_v62  ;;  %v1338_v7 = vmul.f32 %v2933_v31, %v932_v61  ;;  %v930_v3 = vcvt.s32.f32 %v546_v63  ;;  %v934_v8 = vcvt.s32.f32 %v550_v1 }
 0x11e   : > { %1823 = vmatprep.subr.bf16.mxu0 %v1647_v60  ;;  %v1649_v6 = vpack.c.bf16 %v1341_v2, %v1337_v59  ;;  %v937_v11 = vcvt.s32.f32 %v553_v4  ;;  %v941_v12 = vcvt.s32.f32 %v557_v0  ;;  %v555_v9 = vunpack.c.2.s8 %v3211_v26 }
 0x11f   : > { %v1646_v14 = vpack.c.bf16 %v1338_v7, %v1334_v5  ;;  %v1336_v15 = vmul.f32 %v2935_v33, %v930_v3  ;;  %v1340_v13 = vmul.f32 %v2935_v33, %v934_v8  ;;  %v559_v17 = vunpack.c.3.s8 %v3211_v26 }
 0x120   : > { %1946 = vmatprep.subr.bf16.mxu1 %v1649_v6  ;;  %v1343_v18 = vmul.f32 %v2927_v27, %v937_v11  ;;  %v1347_v20 = vmul.f32 %v2927_v27, %v941_v12  ;;  %v939_v16 = vcvt.s32.f32 %v555_v9  ;;  %v552_v22 = vunpack.c.2.s8 %v340_v42 }
 0x121   : > { %1824 = vmatpush1.bf16.msra.mxu0 %v1646_v14  ;;  %v1648_v25 = vpack.c.bf16 %v1340_v13, %v1336_v15  ;;  %v943_v29 = vcvt.s32.f32 %v559_v17  ;;  %v556_v21 = vunpack.c.3.s8 %v340_v42  ;;  %v554_v30 = vunpack.c.2.s8 %v342_v52 }
 0x122   : > { %v1651_v34 = vpack.c.bf16 %v1347_v20, %v1343_v18  ;;  %v1345_v35 = vmul.f32 %v2929_v28, %v939_v16  ;;  %v936_v26 = vcvt.s32.f32 %v552_v22  ;;  %v558_v36 = vunpack.c.3.s8 %v342_v52 }
 0x123   : > { %1947 = vmatpush1.bf16.msra.mxu1 %v1648_v25  ;;  %v1349_v37 = vmul.f32 %v2929_v28, %v943_v29  ;;  %v940_v38 = vcvt.s32.f32 %v556_v21  ;;  %v938_v39 = vcvt.s32.f32 %v554_v30  ;;  %v561_v40 = vunpack.c.0.s8 %v345_v24  ;;  %v349_v21 = vld [vmem:[%s2894_s18 + $0x168] sm:$0xff] }
 0x124   : > { %1825 = vmatprep.subr.bf16.mxu0 %v1651_v34  ;;  %v1342_v41 = vmul.f32 %v2933_v31, %v936_v26  ;;  %v942_v42 = vcvt.s32.f32 %v558_v36  ;;  %v565_v43 = vunpack.c.1.s8 %v345_v24  ;;  %v563_v44 = vunpack.c.0.s8 %v3237_v32  ;;  %v3263_v36 = vld [vmem:[%s2894_s18 + $0x178] sm:$0xff] }
 0x125   : > { %v1653_v46 = vpack.c.bf16 %v1349_v37, %v1345_v35  ;;  %v1346_v47 = vmul.f32 %v2933_v31, %v940_v38  ;;  %v1344_v48 = vmul.f32 %v2935_v33, %v938_v39  ;;  %v945_v49 = vcvt.s32.f32 %v561_v40 }
 0x126   : > { %v1348_v50 = vmul.f32 %v2935_v33, %v942_v42  ;;  %v949_v52 = vcvt.s32.f32 %v565_v43  ;;  %v567_v51 = vunpack.c.1.s8 %v3237_v32  ;;  %v947_v53 = vcvt.s32.f32 %v563_v44 }
 0x127   : > { %1948 = vmatprep.subr.bf16.mxu1 %v1653_v46  ;;  %v1650_v54 = vpack.c.bf16 %v1346_v47, %v1342_v41  ;;  %v1351_v56 = vmul.f32 %v2927_v27, %v945_v49  ;;  %v560_v58 = vunpack.c.0.s8 %v344_v45  ;;  %v564_v57 = vunpack.c.1.s8 %v344_v45 }
 0x128   : > { %v1652_v59 = vpack.c.bf16 %v1348_v50, %v1344_v48  ;;  %v1355_v62 = vmul.f32 %v2927_v27, %v949_v52  ;;  %v951_v61 = vcvt.s32.f32 %v567_v51  ;;  %v1353_v63 = vmul.f32 %v2929_v28, %v947_v53  ;;  %v348_v48 = vld [vmem:[%s2894_s18 + $0x160] sm:$0xff] }
 0x129   : > { %1826 = vmatpush1.bf16.msra.mxu0 %v1650_v54  ;;  %v944_v1 = vcvt.s32.f32 %v560_v58  ;;  %v948_v60 = vcvt.s32.f32 %v564_v57  ;;  %v562_v2 = vunpack.c.0.s8 %v346_v55  ;;  %v566_v4 = vunpack.c.1.s8 %v346_v55  ;;  %v350_v58 = vld [vmem:[%s2894_s18 + $0x170] sm:$0xff] }
 0x12a   : > { %1949 = vmatpush1.bf16.msra.mxu1 %v1652_v59  ;;  %v1655_v0 = vpack.c.bf16 %v1355_v62, %v1351_v56  ;;  %v1357_v5 = vmul.f32 %v2929_v28, %v951_v61  ;;  %v569_v7 = vunpack.c.2.s8 %v345_v24  ;;  %v573_v3 = vunpack.c.3.s8 %v345_v24 }
 0x12b   : > { %v1350_v8 = vmul.f32 %v2933_v31, %v944_v1  ;;  %v1354_v6 = vmul.f32 %v2933_v31, %v948_v60  ;;  %v946_v11 = vcvt.s32.f32 %v562_v2  ;;  %v950_v12 = vcvt.s32.f32 %v566_v4 }
 0x12c   : > { %1827 = vmatprep.subr.bf16.mxu0 %v1655_v0  ;;  %v1657_v9 = vpack.c.bf16 %v1357_v5, %v1353_v63  ;;  %v953_v14 = vcvt.s32.f32 %v569_v7  ;;  %v957_v15 = vcvt.s32.f32 %v573_v3  ;;  %v571_v13 = vunpack.c.2.s8 %v3237_v32 }
 0x12d   : > { %v1654_v17 = vpack.c.bf16 %v1354_v6, %v1350_v8  ;;  %v1352_v18 = vmul.f32 %v2935_v33, %v946_v11  ;;  %v1356_v20 = vmul.f32 %v2935_v33, %v950_v12  ;;  %v575_v16 = vunpack.c.3.s8 %v3237_v32 }
 0x12e   : > { %1950 = vmatprep.subr.bf16.mxu1 %v1657_v9  ;;  %v1359_v22 = vmul.f32 %v2927_v27, %v953_v14  ;;  %v1363_v24 = vmul.f32 %v2927_v27, %v957_v15  ;;  %v955_v25 = vcvt.s32.f32 %v571_v13  ;;  %v568_v29 = vunpack.c.2.s8 %v344_v45 }
 0x12f   : > { %1828 = vmatpush1.bf16.msra.mxu0 %v1654_v17  ;;  %v1656_v30 = vpack.c.bf16 %v1356_v20, %v1352_v18  ;;  %v959_v34 = vcvt.s32.f32 %v575_v16  ;;  %v572_v35 = vunpack.c.3.s8 %v344_v45  ;;  %v570_v26 = vunpack.c.2.s8 %v346_v55 }
 0x130   : > { %v1659_v37 = vpack.c.bf16 %v1363_v24, %v1359_v22  ;;  %v1361_v38 = vmul.f32 %v2929_v28, %v955_v25  ;;  %v952_v32 = vcvt.s32.f32 %v568_v29  ;;  %v574_v39 = vunpack.c.3.s8 %v346_v55 }
 0x131   : > { %1951 = vmatpush1.bf16.msra.mxu1 %v1656_v30  ;;  %v1365_v40 = vmul.f32 %v2929_v28, %v959_v34  ;;  %v956_v41 = vcvt.s32.f32 %v572_v35  ;;  %v954_v42 = vcvt.s32.f32 %v570_v26  ;;  %v577_v43 = vunpack.c.0.s8 %v349_v21  ;;  %v353_v35 = vld [vmem:[%s2894_s18 + $0x188] sm:$0xff] }
 0x132   : > { %1829 = vmatprep.subr.bf16.mxu0 %v1659_v37  ;;  %v1358_v44 = vmul.f32 %v2933_v31, %v952_v32  ;;  %v958_v45 = vcvt.s32.f32 %v574_v39  ;;  %v581_v46 = vunpack.c.1.s8 %v349_v21  ;;  %v579_v47 = vunpack.c.0.s8 %v3263_v36  ;;  %v3289_v39 = vld [vmem:[%s2894_s18 + $0x198] sm:$0xff] }
 0x133   : > { %v1661_v49 = vpack.c.bf16 %v1365_v40, %v1361_v38  ;;  %v1362_v50 = vmul.f32 %v2933_v31, %v956_v41  ;;  %v1360_v52 = vmul.f32 %v2935_v33, %v954_v42  ;;  %v961_v51 = vcvt.s32.f32 %v577_v43 }
 0x134   : > { %v1364_v53 = vmul.f32 %v2935_v33, %v958_v45  ;;  %v965_v55 = vcvt.s32.f32 %v581_v46  ;;  %v583_v54 = vunpack.c.1.s8 %v3263_v36  ;;  %v963_v56 = vcvt.s32.f32 %v579_v47 }
 0x135   : > { %1952 = vmatprep.subr.bf16.mxu1 %v1661_v49  ;;  %v1658_v57 = vpack.c.bf16 %v1362_v50, %v1358_v44  ;;  %v1367_v59 = vmul.f32 %v2927_v27, %v961_v51  ;;  %v576_v62 = vunpack.c.0.s8 %v348_v48  ;;  %v580_v61 = vunpack.c.1.s8 %v348_v48 }
 0x136   : > { %v1660_v63 = vpack.c.bf16 %v1364_v53, %v1360_v52  ;;  %v1371_v1 = vmul.f32 %v2927_v27, %v965_v55  ;;  %v967_v60 = vcvt.s32.f32 %v583_v54  ;;  %v1369_v2 = vmul.f32 %v2929_v28, %v963_v56  ;;  %v352_v52 = vld [vmem:[%s2894_s18 + $0x180] sm:$0xff] }
 0x137   : > { %1830 = vmatpush1.bf16.msra.mxu0 %v1658_v57  ;;  %v960_v4 = vcvt.s32.f32 %v576_v62  ;;  %v964_v0 = vcvt.s32.f32 %v580_v61  ;;  %v578_v5 = vunpack.c.0.s8 %v350_v58  ;;  %v582_v7 = vunpack.c.1.s8 %v350_v58  ;;  %v354_v62 = vld [vmem:[%s2894_s18 + $0x190] sm:$0xff] }
 0x138   : > { %1953 = vmatpush1.bf16.msra.mxu1 %v1660_v63  ;;  %v1663_v3 = vpack.c.bf16 %v1371_v1, %v1367_v59  ;;  %v1373_v8 = vmul.f32 %v2929_v28, %v967_v60  ;;  %v585_v6 = vunpack.c.2.s8 %v349_v21  ;;  %v589_v11 = vunpack.c.3.s8 %v349_v21 }
 0x139   : > { %v1366_v12 = vmul.f32 %v2933_v31, %v960_v4  ;;  %v1370_v9 = vmul.f32 %v2933_v31, %v964_v0  ;;  %v962_v14 = vcvt.s32.f32 %v578_v5  ;;  %v966_v15 = vcvt.s32.f32 %v582_v7 }
 0x13a   : > { %1831 = vmatprep.subr.bf16.mxu0 %v1663_v3  ;;  %v1665_v13 = vpack.c.bf16 %v1373_v8, %v1369_v2  ;;  %v969_v17 = vcvt.s32.f32 %v585_v6  ;;  %v973_v18 = vcvt.s32.f32 %v589_v11  ;;  %v587_v20 = vunpack.c.2.s8 %v3263_v36 }
 0x13b   : > { %v1662_v16 = vpack.c.bf16 %v1370_v9, %v1366_v12  ;;  %v1368_v22 = vmul.f32 %v2935_v33, %v962_v14  ;;  %v1372_v24 = vmul.f32 %v2935_v33, %v966_v15  ;;  %v591_v25 = vunpack.c.3.s8 %v3263_v36 }
 0x13c   : > { %1954 = vmatprep.subr.bf16.mxu1 %v1665_v13  ;;  %v1375_v29 = vmul.f32 %v2927_v27, %v969_v17  ;;  %v1379_v21 = vmul.f32 %v2927_v27, %v973_v18  ;;  %v971_v30 = vcvt.s32.f32 %v587_v20  ;;  %v584_v34 = vunpack.c.2.s8 %v348_v48 }
 0x13d   : > { %1832 = vmatpush1.bf16.msra.mxu0 %v1662_v16  ;;  %v1664_v26 = vpack.c.bf16 %v1372_v24, %v1368_v22  ;;  %v975_v37 = vcvt.s32.f32 %v591_v25  ;;  %v588_v38 = vunpack.c.3.s8 %v348_v48  ;;  %v586_v32 = vunpack.c.2.s8 %v350_v58 }
 0x13e   : > { %v1667_v40 = vpack.c.bf16 %v1379_v21, %v1375_v29  ;;  %v1377_v41 = vmul.f32 %v2929_v28, %v971_v30  ;;  %v968_v36 = vcvt.s32.f32 %v584_v34  ;;  %v590_v42 = vunpack.c.3.s8 %v350_v58 }
 0x13f   : > { %1955 = vmatpush1.bf16.msra.mxu1 %v1664_v26  ;;  %v1381_v43 = vmul.f32 %v2929_v28, %v975_v37  ;;  %v972_v44 = vcvt.s32.f32 %v588_v38  ;;  %v970_v45 = vcvt.s32.f32 %v586_v32  ;;  %v593_v46 = vunpack.c.0.s8 %v353_v35  ;;  %v357_v38 = vld [vmem:[%s2894_s18 + $0x1a8] sm:$0xff] }
 0x140   : > { %1833 = vmatprep.subr.bf16.mxu0 %v1667_v40  ;;  %v1374_v47 = vmul.f32 %v2933_v31, %v968_v36  ;;  %v974_v48 = vcvt.s32.f32 %v590_v42  ;;  %v597_v49 = vunpack.c.1.s8 %v353_v35  ;;  %v595_v50 = vunpack.c.0.s8 %v3289_v39  ;;  %v3315_v42 = vld [vmem:[%s2894_s18 + $0x1b8] sm:$0xff] }
 0x141   : > { %v1669_v51 = vpack.c.bf16 %v1381_v43, %v1377_v41  ;;  %v1378_v53 = vmul.f32 %v2933_v31, %v972_v44  ;;  %v1376_v55 = vmul.f32 %v2935_v33, %v970_v45  ;;  %v977_v54 = vcvt.s32.f32 %v593_v46 }
 0x142   : > { %v1380_v56 = vmul.f32 %v2935_v33, %v974_v48  ;;  %v981_v58 = vcvt.s32.f32 %v597_v49  ;;  %v599_v57 = vunpack.c.1.s8 %v3289_v39  ;;  %v979_v59 = vcvt.s32.f32 %v595_v50 }
 0x143   : > { %1956 = vmatprep.subr.bf16.mxu1 %v1669_v51  ;;  %v1666_v61 = vpack.c.bf16 %v1378_v53, %v1374_v47  ;;  %v1383_v63 = vmul.f32 %v2927_v27, %v977_v54  ;;  %v592_v1 = vunpack.c.0.s8 %v352_v52  ;;  %v596_v60 = vunpack.c.1.s8 %v352_v52 }
 0x144   : > { %v1668_v2 = vpack.c.bf16 %v1380_v56, %v1376_v55  ;;  %v1387_v4 = vmul.f32 %v2927_v27, %v981_v58  ;;  %v983_v0 = vcvt.s32.f32 %v599_v57  ;;  %v1385_v5 = vmul.f32 %v2929_v28, %v979_v59  ;;  %v356_v55 = vld [vmem:[%s2894_s18 + $0x1a0] sm:$0xff] }
 0x145   : > { %1834 = vmatpush1.bf16.msra.mxu0 %v1666_v61  ;;  %v976_v7 = vcvt.s32.f32 %v592_v1  ;;  %v980_v3 = vcvt.s32.f32 %v596_v60  ;;  %v594_v8 = vunpack.c.0.s8 %v354_v62  ;;  %v598_v6 = vunpack.c.1.s8 %v354_v62  ;;  %v358_v1 = vld [vmem:[%s2894_s18 + $0x1b0] sm:$0xff] }
 0x146   : > { %1957 = vmatpush1.bf16.msra.mxu1 %v1668_v2  ;;  %v1671_v11 = vpack.c.bf16 %v1387_v4, %v1383_v63  ;;  %v1389_v12 = vmul.f32 %v2929_v28, %v983_v0  ;;  %v601_v9 = vunpack.c.2.s8 %v353_v35  ;;  %v605_v14 = vunpack.c.3.s8 %v353_v35 }
 0x147   : > { %v1382_v15 = vmul.f32 %v2933_v31, %v976_v7  ;;  %v1386_v13 = vmul.f32 %v2933_v31, %v980_v3  ;;  %v978_v17 = vcvt.s32.f32 %v594_v8  ;;  %v982_v18 = vcvt.s32.f32 %v598_v6 }
 0x148   : > { %1835 = vmatprep.subr.bf16.mxu0 %v1671_v11  ;;  %v1673_v20 = vpack.c.bf16 %v1389_v12, %v1385_v5  ;;  %v985_v16 = vcvt.s32.f32 %v601_v9  ;;  %v989_v22 = vcvt.s32.f32 %v605_v14  ;;  %v603_v24 = vunpack.c.2.s8 %v3289_v39 }
 0x149   : > { %v1670_v25 = vpack.c.bf16 %v1386_v13, %v1382_v15  ;;  %v1384_v29 = vmul.f32 %v2935_v33, %v978_v17  ;;  %v1388_v21 = vmul.f32 %v2935_v33, %v982_v18  ;;  %v607_v30 = vunpack.c.3.s8 %v3289_v39 }
 0x14a   : > { %1958 = vmatprep.subr.bf16.mxu1 %v1673_v20  ;;  %v1391_v34 = vmul.f32 %v2927_v27, %v985_v16  ;;  %v1395_v35 = vmul.f32 %v2927_v27, %v989_v22  ;;  %v987_v26 = vcvt.s32.f32 %v603_v24  ;;  %v600_v37 = vunpack.c.2.s8 %v352_v52 }
 0x14b   : > { %1836 = vmatpush1.bf16.msra.mxu0 %v1670_v25  ;;  %v1672_v32 = vpack.c.bf16 %v1388_v21, %v1384_v29  ;;  %v991_v40 = vcvt.s32.f32 %v607_v30  ;;  %v604_v41 = vunpack.c.3.s8 %v352_v52  ;;  %v602_v36 = vunpack.c.2.s8 %v354_v62 }
 0x14c   : > { %v1675_v43 = vpack.c.bf16 %v1395_v35, %v1391_v34  ;;  %v1393_v44 = vmul.f32 %v2929_v28, %v987_v26  ;;  %v984_v39 = vcvt.s32.f32 %v600_v37  ;;  %v606_v45 = vunpack.c.3.s8 %v354_v62 }
 0x14d   : > { %1959 = vmatpush1.bf16.msra.mxu1 %v1672_v32  ;;  %v1397_v46 = vmul.f32 %v2929_v28, %v991_v40  ;;  %v988_v47 = vcvt.s32.f32 %v604_v41  ;;  %v986_v48 = vcvt.s32.f32 %v602_v36  ;;  %v609_v49 = vunpack.c.0.s8 %v357_v38  ;;  %v361_v41 = vld [vmem:[%s2894_s18 + $0x1c8] sm:$0xff] }
 0x14e   : > { %1837 = vmatprep.subr.bf16.mxu0 %v1675_v43  ;;  %v1390_v50 = vmul.f32 %v2933_v31, %v984_v39  ;;  %v990_v52 = vcvt.s32.f32 %v606_v45  ;;  %v613_v51 = vunpack.c.1.s8 %v357_v38  ;;  %v611_v53 = vunpack.c.0.s8 %v3315_v42  ;;  %v3341_v45 = vld [vmem:[%s2894_s18 + $0x1d8] sm:$0xff] }
 0x14f   : > { %v1677_v54 = vpack.c.bf16 %v1397_v46, %v1393_v44  ;;  %v1394_v56 = vmul.f32 %v2933_v31, %v988_v47  ;;  %v1392_v58 = vmul.f32 %v2935_v33, %v986_v48  ;;  %v993_v57 = vcvt.s32.f32 %v609_v49 }
 0x150   : > { %v1396_v59 = vmul.f32 %v2935_v33, %v990_v52  ;;  %v997_v62 = vcvt.s32.f32 %v613_v51  ;;  %v615_v61 = vunpack.c.1.s8 %v3315_v42  ;;  %v995_v63 = vcvt.s32.f32 %v611_v53 }
 0x151   : > { %1960 = vmatprep.subr.bf16.mxu1 %v1677_v54  ;;  %v1674_v60 = vpack.c.bf16 %v1394_v56, %v1390_v50  ;;  %v1399_v2 = vmul.f32 %v2927_v27, %v993_v57  ;;  %v608_v4 = vunpack.c.0.s8 %v356_v55  ;;  %v612_v0 = vunpack.c.1.s8 %v356_v55 }
 0x152   : > { %v1676_v5 = vpack.c.bf16 %v1396_v59, %v1392_v58  ;;  %v1403_v7 = vmul.f32 %v2927_v27, %v997_v62  ;;  %v999_v3 = vcvt.s32.f32 %v615_v61  ;;  %v1401_v8 = vmul.f32 %v2929_v28, %v995_v63  ;;  %v360_v58 = vld [vmem:[%s2894_s18 + $0x1c0] sm:$0xff] }
 0x153   : > { %1838 = vmatpush1.bf16.msra.mxu0 %v1674_v60  ;;  %v992_v6 = vcvt.s32.f32 %v608_v4  ;;  %v996_v11 = vcvt.s32.f32 %v612_v0  ;;  %v610_v12 = vunpack.c.0.s8 %v358_v1  ;;  %v614_v9 = vunpack.c.1.s8 %v358_v1  ;;  %v362_v4 = vld [vmem:[%s2894_s18 + $0x1d0] sm:$0xff] }
 0x154   : > { %1961 = vmatpush1.bf16.msra.mxu1 %v1676_v5  ;;  %v1679_v14 = vpack.c.bf16 %v1403_v7, %v1399_v2  ;;  %v1405_v15 = vmul.f32 %v2929_v28, %v999_v3  ;;  %v617_v13 = vunpack.c.2.s8 %v357_v38  ;;  %v621_v17 = vunpack.c.3.s8 %v357_v38 }
 0x155   : > { %v1398_v18 = vmul.f32 %v2933_v31, %v992_v6  ;;  %v1402_v20 = vmul.f32 %v2933_v31, %v996_v11  ;;  %v994_v16 = vcvt.s32.f32 %v610_v12  ;;  %v998_v22 = vcvt.s32.f32 %v614_v9 }
 0x156   : > { %1839 = vmatprep.subr.bf16.mxu0 %v1679_v14  ;;  %v1681_v24 = vpack.c.bf16 %v1405_v15, %v1401_v8  ;;  %v1001_v25 = vcvt.s32.f32 %v617_v13  ;;  %v1005_v29 = vcvt.s32.f32 %v621_v17  ;;  %v619_v21 = vunpack.c.2.s8 %v3315_v42 }
 0x157   : > { %v1678_v30 = vpack.c.bf16 %v1402_v20, %v1398_v18  ;;  %v1400_v34 = vmul.f32 %v2935_v33, %v994_v16  ;;  %v1404_v35 = vmul.f32 %v2935_v33, %v998_v22  ;;  %v623_v26 = vunpack.c.3.s8 %v3315_v42 }
 0x158   : > { %1962 = vmatprep.subr.bf16.mxu1 %v1681_v24  ;;  %v1407_v37 = vmul.f32 %v2927_v27, %v1001_v25  ;;  %v1411_v38 = vmul.f32 %v2927_v27, %v1005_v29  ;;  %v1003_v32 = vcvt.s32.f32 %v619_v21  ;;  %v616_v40 = vunpack.c.2.s8 %v356_v55 }
 0x159   : > { %1840 = vmatpush1.bf16.msra.mxu0 %v1678_v30  ;;  %v1680_v36 = vpack.c.bf16 %v1404_v35, %v1400_v34  ;;  %v1007_v43 = vcvt.s32.f32 %v623_v26  ;;  %v620_v44 = vunpack.c.3.s8 %v356_v55  ;;  %v618_v39 = vunpack.c.2.s8 %v358_v1 }
 0x15a   : > { %v1683_v46 = vpack.c.bf16 %v1411_v38, %v1407_v37  ;;  %v1409_v47 = vmul.f32 %v2929_v28, %v1003_v32  ;;  %v1000_v42 = vcvt.s32.f32 %v616_v40  ;;  %v622_v48 = vunpack.c.3.s8 %v358_v1 }
 0x15b   : > { %1963 = vmatpush1.bf16.msra.mxu1 %v1680_v36  ;;  %v1413_v49 = vmul.f32 %v2929_v28, %v1007_v43  ;;  %v1004_v50 = vcvt.s32.f32 %v620_v44  ;;  %v1002_v52 = vcvt.s32.f32 %v618_v39  ;;  %v625_v51 = vunpack.c.0.s8 %v361_v41  ;;  %v365_v44 = vld [vmem:[%s2894_s18 + $0x1e8] sm:$0xff] }
 0x15c   : > { %1841 = vmatprep.subr.bf16.mxu0 %v1683_v46  ;;  %v1406_v53 = vmul.f32 %v2933_v31, %v1000_v42  ;;  %v1006_v55 = vcvt.s32.f32 %v622_v48  ;;  %v629_v54 = vunpack.c.1.s8 %v361_v41  ;;  %v627_v56 = vunpack.c.0.s8 %v3341_v45  ;;  %v3367_v48 = vld [vmem:[%s2894_s18 + $0x1f8] sm:$0xff] }
 0x15d   : > { %v1685_v57 = vpack.c.bf16 %v1413_v49, %v1409_v47  ;;  %v1410_v59 = vmul.f32 %v2933_v31, %v1004_v50  ;;  %v1408_v62 = vmul.f32 %v2935_v33, %v1002_v52  ;;  %v1009_v61 = vcvt.s32.f32 %v625_v51 }
 0x15e   : > { %v1412_v63 = vmul.f32 %v2935_v33, %v1006_v55  ;;  %v1013_v1 = vcvt.s32.f32 %v629_v54  ;;  %v631_v60 = vunpack.c.1.s8 %v3341_v45  ;;  %v1011_v2 = vcvt.s32.f32 %v627_v56 }
 0x15f   : > { %1964 = vmatprep.subr.bf16.mxu1 %v1685_v57  ;;  %v1682_v0 = vpack.c.bf16 %v1410_v59, %v1406_v53  ;;  %v1415_v5 = vmul.f32 %v2927_v27, %v1009_v61  ;;  %v624_v7 = vunpack.c.0.s8 %v360_v58  ;;  %v628_v3 = vunpack.c.1.s8 %v360_v58 }
 0x160   : > { %v1684_v8 = vpack.c.bf16 %v1412_v63, %v1408_v62  ;;  %v1419_v6 = vmul.f32 %v2927_v27, %v1013_v1  ;;  %v1015_v11 = vcvt.s32.f32 %v631_v60  ;;  %v1417_v12 = vmul.f32 %v2929_v28, %v1011_v2  ;;  %v364_v62 = vld [vmem:[%s2894_s18 + $0x1e0] sm:$0xff] }
 0x161   : > { %1842 = vmatpush1.bf16.msra.mxu0 %v1682_v0  ;;  %v1008_v9 = vcvt.s32.f32 %v624_v7  ;;  %v1012_v14 = vcvt.s32.f32 %v628_v3  ;;  %v626_v15 = vunpack.c.0.s8 %v362_v4  ;;  %v630_v13 = vunpack.c.1.s8 %v362_v4  ;;  %v366_v7 = vld [vmem:[%s2894_s18 + $0x1f0] sm:$0xff] }
 0x162   : > { %1965 = vmatpush1.bf16.msra.mxu1 %v1684_v8  ;;  %v1687_v17 = vpack.c.bf16 %v1419_v6, %v1415_v5  ;;  %v1421_v18 = vmul.f32 %v2929_v28, %v1015_v11  ;;  %v633_v20 = vunpack.c.2.s8 %v361_v41  ;;  %v637_v16 = vunpack.c.3.s8 %v361_v41 }
 0x163   : > { %v1414_v22 = vmul.f32 %v2933_v31, %v1008_v9  ;;  %v1418_v24 = vmul.f32 %v2933_v31, %v1012_v14  ;;  %v1010_v25 = vcvt.s32.f32 %v626_v15  ;;  %v1014_v29 = vcvt.s32.f32 %v630_v13 }
 0x164   : > { %1843 = vmatprep.subr.bf16.mxu0 %v1687_v17  ;;  %v1689_v21 = vpack.c.bf16 %v1421_v18, %v1417_v12  ;;  %v1017_v30 = vcvt.s32.f32 %v633_v20  ;;  %v1021_v34 = vcvt.s32.f32 %v637_v16  ;;  %v635_v35 = vunpack.c.2.s8 %v3341_v45 }
 0x165   : > { %v1686_v26 = vpack.c.bf16 %v1418_v24, %v1414_v22  ;;  %v1416_v37 = vmul.f32 %v2935_v33, %v1010_v25  ;;  %v1420_v38 = vmul.f32 %v2935_v33, %v1014_v29  ;;  %v639_v32 = vunpack.c.3.s8 %v3341_v45 }
 0x166   : > { %1966 = vmatprep.subr.bf16.mxu1 %v1689_v21  ;;  %v1423_v40 = vmul.f32 %v2927_v27, %v1017_v30  ;;  %v1427_v41 = vmul.f32 %v2927_v27, %v1021_v34  ;;  %v1019_v36 = vcvt.s32.f32 %v635_v35  ;;  %v632_v43 = vunpack.c.2.s8 %v360_v58 }
 0x167   : > { %1844 = vmatpush1.bf16.msra.mxu0 %v1686_v26  ;;  %v1688_v39 = vpack.c.bf16 %v1420_v38, %v1416_v37  ;;  %v1023_v46 = vcvt.s32.f32 %v639_v32  ;;  %v636_v47 = vunpack.c.3.s8 %v360_v58  ;;  %v634_v42 = vunpack.c.2.s8 %v362_v4 }
 0x168   : > { %v1691_v49 = vpack.c.bf16 %v1427_v41, %v1423_v40  ;;  %v1425_v50 = vmul.f32 %v2929_v28, %v1019_v36  ;;  %v1016_v45 = vcvt.s32.f32 %v632_v43  ;;  %v638_v52 = vunpack.c.3.s8 %v362_v4 }
 0x169   : > { %1967 = vmatpush1.bf16.msra.mxu1 %v1688_v39  ;;  %v1429_v51 = vmul.f32 %v2929_v28, %v1023_v46  ;;  %v1020_v53 = vcvt.s32.f32 %v636_v47  ;;  %v1018_v55 = vcvt.s32.f32 %v634_v42  ;;  %v641_v54 = vunpack.c.0.s8 %v365_v44  ;;  %v1769_v47 = vld [vmem:[%s3609_s0 + $0x18] sm:$0xff] }
 0x16a   : > { %1845 = vmatprep.subr.bf16.mxu0 %v1691_v49  ;;  %v1422_v56 = vmul.f32 %v2933_v31, %v1016_v45  ;;  %v1022_v58 = vcvt.s32.f32 %v638_v52  ;;  %v645_v57 = vunpack.c.1.s8 %v365_v44  ;;  %v643_v59 = vunpack.c.0.s8 %v3367_v48  ;;  %v369_v52 = vld [vmem:[%s2894_s18 + $0x208] sm:$0xff] }
 0x16b   : > { %v1693_v61 = vpack.c.bf16 %v1429_v51, %v1425_v50  ;;  %v1426_v63 = vmul.f32 %v2933_v31, %v1020_v53  ;;  %v1424_v1 = vmul.f32 %v2935_v33, %v1018_v55  ;;  %v1025_v60 = vcvt.s32.f32 %v641_v54  ;;  %v3397_v54 = vld [vmem:[%s2894_s18 + $0x218] sm:$0xff] }
 0x16c   : > { %v1428_v2 = vmul.f32 %v2935_v33, %v1022_v58  ;;  %v1029_v4 = vcvt.s32.f32 %v645_v57  ;;  %v647_v0 = vunpack.c.1.s8 %v3367_v48  ;;  %v1027_v5 = vcvt.s32.f32 %v643_v59 }
 0x16d   : > { %1968 = vmatprep.subr.bf16.mxu1 %v1693_v61  ;;  %v1690_v3 = vpack.c.bf16 %v1426_v63, %v1422_v56  ;;  %v1431_v8 = vmul.f32 %v2927_v27, %v1025_v60  ;;  %v640_v6 = vunpack.c.0.s8 %v364_v62  ;;  %v644_v11 = vunpack.c.1.s8 %v364_v62  ;;  %v1768_v60 = vld [vmem:[%s3609_s0 + $0x10] sm:$0xff] }
 0x16e   : > { %v1692_v12 = vpack.c.bf16 %v1428_v2, %v1424_v1  ;;  %v1435_v9 = vmul.f32 %v2927_v27, %v1029_v4  ;;  %v1031_v14 = vcvt.s32.f32 %v647_v0  ;;  %v1433_v15 = vmul.f32 %v2929_v28, %v1027_v5  ;;  %v3405_v2 = vld [vmem:[%s2894_s18 + $0x200] sm:$0xff] }
 0x16f   : > { %1846 = vmatpush1.bf16.msra.mxu0 %v1690_v3  ;;  %v1024_v13 = vcvt.s32.f32 %v640_v6  ;;  %v1028_v17 = vcvt.s32.f32 %v644_v11  ;;  %v642_v18 = vunpack.c.0.s8 %v366_v7  ;;  %v646_v20 = vunpack.c.1.s8 %v366_v7 }
 0x170   : > { %1969 = vmatpush1.bf16.msra.mxu1 %v1692_v12  ;;  %v1695_v16 = vpack.c.bf16 %v1435_v9, %v1431_v8  ;;  %v1437_v22 = vmul.f32 %v2929_v28, %v1031_v14  ;;  %v649_v24 = vunpack.c.2.s8 %v365_v44  ;;  %v653_v25 = vunpack.c.3.s8 %v365_v44  ;;  %v3413_v12 = vld [vmem:[%s2894_s18 + $0x210] sm:$0xff] }
 0x171   : > { %v1430_v29 = vmul.f32 %v2933_v31, %v1024_v13  ;;  %v1434_v21 = vmul.f32 %v2933_v31, %v1028_v17  ;;  %v1026_v30 = vcvt.s32.f32 %v642_v18  ;;  %v1030_v34 = vcvt.s32.f32 %v646_v20 }
 0x172   : > { %1847 = vmatprep.subr.bf16.mxu0 %v1695_v16  ;;  %v1697_v35 = vpack.c.bf16 %v1437_v22, %v1433_v15  ;;  %v1033_v26 = vcvt.s32.f32 %v649_v24  ;;  %v1037_v37 = vcvt.s32.f32 %v653_v25  ;;  %v651_v38 = vunpack.c.2.s8 %v3367_v48 }
 0x173   : > { %v1694_v32 = vpack.c.bf16 %v1434_v21, %v1430_v29  ;;  %v1432_v40 = vmul.f32 %v2935_v33, %v1026_v30  ;;  %v1436_v41 = vmul.f32 %v2935_v33, %v1030_v34  ;;  %v655_v36 = vunpack.c.3.s8 %v3367_v48 }
 0x174   : > { %1970 = vmatprep.subr.bf16.mxu1 %v1697_v35  ;;  %v1439_v43 = vmul.f32 %v2927_v27, %v1033_v26  ;;  %v1443_v44 = vmul.f32 %v2927_v27, %v1037_v37  ;;  %v1035_v39 = vcvt.s32.f32 %v651_v38  ;;  %v648_v46 = vunpack.c.2.s8 %v364_v62 }
 0x175   : > { %1848 = vmatpush1.bf16.msra.mxu0 %v1694_v32  ;;  %v1696_v42 = vpack.c.bf16 %v1436_v41, %v1432_v40  ;;  %v1039_v49 = vcvt.s32.f32 %v655_v36  ;;  %v652_v50 = vunpack.c.3.s8 %v364_v62  ;;  %v650_v45 = vunpack.c.2.s8 %v366_v7 }
 0x176   : > { %v1699_v51 = vpack.c.bf16 %v1443_v44, %v1439_v43  ;;  %v1441_v48 = vmul.f32 %v2929_v28, %v1035_v39  ;;  %v1032_v53 = vcvt.s32.f32 %v648_v46  ;;  %v654_v55 = vunpack.c.3.s8 %v366_v7 }
 0x177   : > { %1971 = vmatpush1.bf16.msra.mxu1 %v1696_v42  ;;  %v1445_v56 = vmul.f32 %v2929_v28, %v1039_v49  ;;  %v1036_v58 = vcvt.s32.f32 %v652_v50  ;;  %v1034_v57 = vcvt.s32.f32 %v650_v45  ;;  %v1775_v59 = vpack.c.bf16 %v1769_v47, %v1769_v47 }
 0x178   : > { %1849 = vmatprep.subr.bf16.mxu0 %v1699_v51  ;;  %v1438_v61 = vmul.f32 %v2933_v31, %v1032_v53  ;;  %v1038_v62 = vcvt.s32.f32 %v654_v55  ;;  %v657_v63 = vunpack.c.0.s8 %v369_v52  ;;  %v661_v1 = vunpack.c.1.s8 %v369_v52  ;;  %v373_v55 = vld [vmem:[%s2894_s18 + $0x228] sm:$0xff] }
 0x179   : > { %v1701_v4 = vpack.c.bf16 %v1445_v56, %v1441_v48  ;;  %v1442_v0 = vmul.f32 %v2933_v31, %v1036_v58  ;;  %v1440_v5 = vmul.f32 %v2935_v33, %v1034_v57  ;;  %1851 = vmatprep.mubr.bf16.mxu0 %v1775_v59  ;;  %1974 = vmatprep.mubr.bf16.mxu1 %v1775_v59  ;;  %v659_v7 = vunpack.c.0.s8 %v3397_v54  ;;  %v375_v59 = vld [vmem:[%s2894_s18 + $0x238] sm:$0xff] }
 0x17a   : > { %v1444_v3 = vmul.f32 %v2935_v33, %v1038_v62  ;;  %v1041_v8 = vcvt.s32.f32 %v657_v63  ;;  %v1045_v6 = vcvt.s32.f32 %v661_v1  ;;  %v663_v11 = vunpack.c.1.s8 %v3397_v54 }
 0x17b   : > { %1972 = vmatprep.subr.bf16.mxu1 %v1701_v4  ;;  %v1698_v9 = vpack.c.bf16 %v1442_v0, %v1438_v61  ;;  %v1043_v14 = vcvt.s32.f32 %v659_v7  ;;  %v1774_v15 = vpack.c.bf16 %v1768_v60, %v1768_v60  ;;  %v656_v13 = vunpack.c.0.s8 %v3405_v2 }
 0x17c   : > { %v1700_v17 = vpack.c.bf16 %v1444_v3, %v1440_v5  ;;  %v1447_v18 = vmul.f32 %v2927_v27, %v1041_v8  ;;  %v1451_v20 = vmul.f32 %v2927_v27, %v1045_v6  ;;  %v1047_v16 = vcvt.s32.f32 %v663_v11  ;;  %v372_v5 = vld [vmem:[%s2894_s18 + $0x220] sm:$0xff] }
 0x17d   : > { %1850 = vmatpush1.bf16.msra.mxu0 %v1698_v9  ;;  %v1449_v22 = vmul.f32 %v2929_v28, %v1043_v14  ;;  %v660_v24 = vunpack.c.1.s8 %v3405_v2  ;;  %v1040_v25 = vcvt.s32.f32 %v656_v13  ;;  %v658_v29 = vunpack.c.0.s8 %v3413_v12 }
 0x17e   : > { %1973 = vmatpush1.bf16.msra.mxu1 %v1700_v17  ;;  %v1703_v21 = vpack.c.bf16 %v1451_v20, %v1447_v18  ;;  %v1453_v30 = vmul.f32 %v2929_v28, %v1047_v16  ;;  %v662_v34 = vunpack.c.1.s8 %v3413_v12  ;;  %v665_v35 = vunpack.c.2.s8 %v369_v52 }
 0x17f   : > { %v1044_v26 = vcvt.s32.f32 %v660_v24  ;;  %v1446_v37 = vmul.f32 %v2933_v31, %v1040_v25  ;;  %v1042_v38 = vcvt.s32.f32 %v658_v29  ;;  %v669_v32 = vunpack.c.3.s8 %v369_v52 }
 0x180   : > { %1860 = vmatprep.subr.bf16.mxu0 %v1703_v21  ;;  %v1705_v40 = vpack.c.bf16 %v1453_v30, %v1449_v22  ;;  %1852 = vmatmul.mubr.bf16.vlgmr.msra.gmra.mrb[0].mxu0 %v1774_v15  ;;  %v1046_v41 = vcvt.s32.f32 %v662_v34  ;;  %v1049_v36 = vcvt.s32.f32 %v665_v35  ;;  %v667_v43 = vunpack.c.2.s8 %v3397_v54 }
 0x181   : > { %v1450_v44 = vmul.f32 %v2933_v31, %v1044_v26  ;;  %1975 = vmatmul.mubr.bf16.vlgmr.msra.gmra.mrb[0].mxu1 %v1774_v15  ;;  %v1448_v39 = vmul.f32 %v2935_v33, %v1042_v38  ;;  %v1053_v46 = vcvt.s32.f32 %v669_v32  ;;  %v671_v47 = vunpack.c.3.s8 %v3397_v54 }
 0x182   : > { %1983 = vmatprep.subr.bf16.mxu1 %v1705_v40  ;;  %v1452_v42 = vmul.f32 %v2935_v33, %v1046_v41  ;;  %v1455_v49 = vmul.f32 %v2927_v27, %v1049_v36  ;;  %v1051_v50 = vcvt.s32.f32 %v667_v43  ;;  %v664_v45 = vunpack.c.2.s8 %v3405_v2 }
 0x183   : > { %v1702_v52 = vpack.c.bf16 %v1450_v44, %v1446_v37  ;;  %v1459_v51 = vmul.f32 %v2927_v27, %v1053_v46  ;;  %v1055_v48 = vcvt.s32.f32 %v671_v47  ;;  %v668_v53 = vunpack.c.3.s8 %v3405_v2 }
 0x184   : > { %v1704_v56 = vpack.c.bf16 %v1452_v42, %v1448_v39  ;;  %v1457_v58 = vmul.f32 %v2929_v28, %v1051_v50  ;;  %v1048_v54 = vcvt.s32.f32 %v664_v45  ;;  %v666_v57 = vunpack.c.2.s8 %v3413_v12 }
 0x185   : > { %1861 = vmatpush1.bf16.msra.mxu0 %v1702_v52  ;;  %v1707_v61 = vpack.c.bf16 %v1459_v51, %v1455_v49  ;;  %v1461_v62 = vmul.f32 %v2929_v28, %v1055_v48  ;;  %v1052_v63 = vcvt.s32.f32 %v668_v53  ;;  %v670_v1 = vunpack.c.3.s8 %v3413_v12  ;;  %v374_v12 = vld [vmem:[%s2894_s18 + $0x230] sm:$0xff] }
 0x186   : > { %1984 = vmatpush1.bf16.msra.mxu1 %v1704_v56  ;;  %v1454_v60 = vmul.f32 %v2933_v31, %v1048_v54  ;;  %v1050_v2 = vcvt.s32.f32 %v666_v57  ;;  %v673_v4 = vunpack.c.0.s8 %v373_v55  ;;  %v677_v0 = vunpack.c.1.s8 %v373_v55  ;;  %v377_v54 = vld [vmem:[%s2894_s18 + $0x248] sm:$0xff] }
 0x187   : > { %1862 = vmatprep.subr.bf16.mxu0 %v1707_v61  ;;  %v1709_v7 = vpack.c.bf16 %v1461_v62, %v1457_v58  ;;  %v1458_v3 = vmul.f32 %v2933_v31, %v1052_v63  ;;  %v1054_v8 = vcvt.s32.f32 %v670_v1  ;;  %v675_v6 = vunpack.c.0.s8 %v375_v59  ;;  %v379_v63 = vld [vmem:[%s2894_s18 + $0x258] sm:$0xff] }
 0x188   : > { %v1456_v11 = vmul.f32 %v2935_v33, %v1050_v2  ;;  %v1057_v9 = vcvt.s32.f32 %v673_v4  ;;  %v1061_v14 = vcvt.s32.f32 %v677_v0  ;;  %v679_v15 = vunpack.c.1.s8 %v375_v59 }
 0x189   : > { %1985 = vmatprep.subr.bf16.mxu1 %v1709_v7  ;;  %v1706_v13 = vpack.c.bf16 %v1458_v3, %v1454_v60  ;;  %v1460_v17 = vmul.f32 %v2935_v33, %v1054_v8  ;;  %v1059_v18 = vcvt.s32.f32 %v675_v6  ;;  %v672_v20 = vunpack.c.0.s8 %v372_v5  ;;  %v376_v8 = vld [vmem:[%s2894_s18 + $0x240] sm:$0xff] }
 0x18a   : > { %v1463_v16 = vmul.f32 %v2927_v27, %v1057_v9  ;;  %v1467_v22 = vmul.f32 %v2927_v27, %v1061_v14  ;;  %v1063_v24 = vcvt.s32.f32 %v679_v15  ;;  %v676_v25 = vunpack.c.1.s8 %v372_v5 }
 0x18b   : > { %1863 = vmatpush1.bf16.msra.mxu0 %v1706_v13  ;;  %v1708_v29 = vpack.c.bf16 %v1460_v17, %v1456_v11  ;;  %v1465_v21 = vmul.f32 %v2929_v28, %v1059_v18  ;;  %v1056_v30 = vcvt.s32.f32 %v672_v20  ;;  %v674_v34 = vunpack.c.0.s8 %v374_v12 }
 0x18c   : > { %v1711_v35 = vpack.c.bf16 %v1467_v22, %v1463_v16  ;;  %v1469_v26 = vmul.f32 %v2929_v28, %v1063_v24  ;;  %v1060_v37 = vcvt.s32.f32 %v676_v25  ;;  %v678_v38 = vunpack.c.1.s8 %v374_v12 }
 0x18d   : > { %1986 = vmatpush1.bf16.msra.mxu1 %v1708_v29  ;;  %v1462_v32 = vmul.f32 %v2933_v31, %v1056_v30  ;;  %v1058_v40 = vcvt.s32.f32 %v674_v34  ;;  %v681_v41 = vunpack.c.2.s8 %v373_v55  ;;  %v685_v36 = vunpack.c.3.s8 %v373_v55 }
 0x18e   : > { %1864 = vmatprep.subr.bf16.mxu0 %v1711_v35  ;;  %v1713_v43 = vpack.c.bf16 %v1469_v26, %v1465_v21  ;;  %v1466_v44 = vmul.f32 %v2933_v31, %v1060_v37  ;;  %v1062_v39 = vcvt.s32.f32 %v678_v38  ;;  %v683_v46 = vunpack.c.2.s8 %v375_v59 }
 0x18f   : > { %v1464_v47 = vmul.f32 %v2935_v33, %v1058_v40  ;;  %v1065_v42 = vcvt.s32.f32 %v681_v41  ;;  %v1069_v49 = vcvt.s32.f32 %v685_v36  ;;  %v687_v50 = vunpack.c.3.s8 %v375_v59 }
 0x190   : > { %1987 = vmatprep.subr.bf16.mxu1 %v1713_v43  ;;  %v1710_v45 = vpack.c.bf16 %v1466_v44, %v1462_v32  ;;  %v1468_v52 = vmul.f32 %v2935_v33, %v1062_v39  ;;  %v1067_v51 = vcvt.s32.f32 %v683_v46  ;;  %v680_v48 = vunpack.c.2.s8 %v372_v5 }
 0x191   : > { %v1471_v53 = vmul.f32 %v2927_v27, %v1065_v42  ;;  %v1475_v55 = vmul.f32 %v2927_v27, %v1069_v49  ;;  %v1071_v56 = vcvt.s32.f32 %v687_v50  ;;  %v684_v58 = vunpack.c.3.s8 %v372_v5 }
 0x192   : > { %1865 = vmatpush1.bf16.msra.mxu0 %v1710_v45  ;;  %v1712_v57 = vpack.c.bf16 %v1468_v52, %v1464_v47  ;;  %v1473_v61 = vmul.f32 %v2929_v28, %v1067_v51  ;;  %v1064_v59 = vcvt.s32.f32 %v680_v48  ;;  %v682_v62 = vunpack.c.2.s8 %v374_v12 }
 0x193   : > { %v1715_v1 = vpack.c.bf16 %v1475_v55, %v1471_v53  ;;  %v1477_v60 = vmul.f32 %v2929_v28, %v1071_v56  ;;  %v1068_v2 = vcvt.s32.f32 %v684_v58  ;;  %v686_v4 = vunpack.c.3.s8 %v374_v12  ;;  %v378_v12 = vld [vmem:[%s2894_s18 + $0x250] sm:$0xff] }
 0x194   : > { %1988 = vmatpush1.bf16.msra.mxu1 %v1712_v57  ;;  %v1470_v0 = vmul.f32 %v2933_v31, %v1064_v59  ;;  %v1066_v7 = vcvt.s32.f32 %v682_v62  ;;  %v689_v5 = vunpack.c.0.s8 %v377_v54  ;;  %v693_v3 = vunpack.c.1.s8 %v377_v54  ;;  %v381_v59 = vld [vmem:[%s2894_s18 + $0x268] sm:$0xff] }
 0x195   : > { %1866 = vmatprep.subr.bf16.mxu0 %v1715_v1  ;;  %v1717_v6 = vpack.c.bf16 %v1477_v60, %v1473_v61  ;;  %v1474_v11 = vmul.f32 %v2933_v31, %v1068_v2  ;;  %v1070_v9 = vcvt.s32.f32 %v686_v4  ;;  %v691_v14 = vunpack.c.0.s8 %v379_v63  ;;  %v383_v2 = vld [vmem:[%s2894_s18 + $0x278] sm:$0xff] }
 0x196   : > { %v1472_v15 = vmul.f32 %v2935_v33, %v1066_v7  ;;  %v1073_v13 = vcvt.s32.f32 %v689_v5  ;;  %v1077_v17 = vcvt.s32.f32 %v693_v3  ;;  %v695_v18 = vunpack.c.1.s8 %v379_v63 }
 0x197   : > { %1989 = vmatprep.subr.bf16.mxu1 %v1717_v6  ;;  %v1714_v20 = vpack.c.bf16 %v1474_v11, %v1470_v0  ;;  %v1476_v16 = vmul.f32 %v2935_v33, %v1070_v9  ;;  %v1075_v22 = vcvt.s32.f32 %v691_v14  ;;  %v688_v24 = vunpack.c.0.s8 %v376_v8  ;;  %v380_v9 = vld [vmem:[%s2894_s18 + $0x260] sm:$0xff] }
 0x198   : > { %v1479_v25 = vmul.f32 %v2927_v27, %v1073_v13  ;;  %v1483_v29 = vmul.f32 %v2927_v27, %v1077_v17  ;;  %v1079_v21 = vcvt.s32.f32 %v695_v18  ;;  %v692_v30 = vunpack.c.1.s8 %v376_v8 }
 0x199   : > { %1867 = vmatpush1.bf16.msra.mxu0 %v1714_v20  ;;  %v1716_v34 = vpack.c.bf16 %v1476_v16, %v1472_v15  ;;  %v1481_v35 = vmul.f32 %v2929_v28, %v1075_v22  ;;  %v1072_v26 = vcvt.s32.f32 %v688_v24  ;;  %v690_v37 = vunpack.c.0.s8 %v378_v12 }
 0x19a   : > { %v1719_v38 = vpack.c.bf16 %v1483_v29, %v1479_v25  ;;  %v1485_v32 = vmul.f32 %v2929_v28, %v1079_v21  ;;  %v1076_v40 = vcvt.s32.f32 %v692_v30  ;;  %v694_v41 = vunpack.c.1.s8 %v378_v12 }
 0x19b   : > { %1990 = vmatpush1.bf16.msra.mxu1 %v1716_v34  ;;  %v1478_v36 = vmul.f32 %v2933_v31, %v1072_v26  ;;  %v1074_v43 = vcvt.s32.f32 %v690_v37  ;;  %v697_v44 = vunpack.c.2.s8 %v377_v54  ;;  %v701_v39 = vunpack.c.3.s8 %v377_v54 }
 0x19c   : > { %1868 = vmatprep.subr.bf16.mxu0 %v1719_v38  ;;  %v1721_v46 = vpack.c.bf16 %v1485_v32, %v1481_v35  ;;  %v1482_v47 = vmul.f32 %v2933_v31, %v1076_v40  ;;  %v1078_v42 = vcvt.s32.f32 %v694_v41  ;;  %v699_v49 = vunpack.c.2.s8 %v379_v63 }
 0x19d   : > { %v1480_v50 = vmul.f32 %v2935_v33, %v1074_v43  ;;  %v1081_v45 = vcvt.s32.f32 %v697_v44  ;;  %v1085_v52 = vcvt.s32.f32 %v701_v39  ;;  %v703_v51 = vunpack.c.3.s8 %v379_v63 }
 0x19e   : > { %1991 = vmatprep.subr.bf16.mxu1 %v1721_v46  ;;  %v1718_v48 = vpack.c.bf16 %v1482_v47, %v1478_v36  ;;  %v1484_v53 = vmul.f32 %v2935_v33, %v1078_v42  ;;  %v1083_v55 = vcvt.s32.f32 %v699_v49  ;;  %v696_v56 = vunpack.c.2.s8 %v376_v8 }
 0x19f   : > { %v1487_v58 = vmul.f32 %v2927_v27, %v1081_v45  ;;  %v1491_v54 = vmul.f32 %v2927_v27, %v1085_v52  ;;  %v1087_v57 = vcvt.s32.f32 %v703_v51  ;;  %v700_v61 = vunpack.c.3.s8 %v376_v8 }
 0x1a0   : > { %1869 = vmatpush1.bf16.msra.mxu0 %v1718_v48  ;;  %v1720_v62 = vpack.c.bf16 %v1484_v53, %v1480_v50  ;;  %v1489_v1 = vmul.f32 %v2929_v28, %v1083_v55  ;;  %v1080_v63 = vcvt.s32.f32 %v696_v56  ;;  %v698_v60 = vunpack.c.2.s8 %v378_v12 }
 0x1a1   : > { %v1723_v4 = vpack.c.bf16 %v1491_v54, %v1487_v58  ;;  %v1493_v0 = vmul.f32 %v2929_v28, %v1087_v57  ;;  %v1084_v7 = vcvt.s32.f32 %v700_v61  ;;  %v702_v5 = vunpack.c.3.s8 %v378_v12  ;;  %v382_v12 = vld [vmem:[%s2894_s18 + $0x270] sm:$0xff] }
 0x1a2   : > { %1992 = vmatpush1.bf16.msra.mxu1 %v1720_v62  ;;  %v1486_v3 = vmul.f32 %v2933_v31, %v1080_v63  ;;  %v1082_v6 = vcvt.s32.f32 %v698_v60  ;;  %v705_v8 = vunpack.c.0.s8 %v381_v59  ;;  %v709_v11 = vunpack.c.1.s8 %v381_v59  ;;  %v385_v63 = vld [vmem:[%s2894_s18 + $0x288] sm:$0xff] }
 0x1a3   : > { %1870 = vmatprep.subr.bf16.mxu0 %v1723_v4  ;;  %v1725_v14 = vpack.c.bf16 %v1493_v0, %v1489_v1  ;;  %v1490_v15 = vmul.f32 %v2933_v31, %v1084_v7  ;;  %v1086_v13 = vcvt.s32.f32 %v702_v5  ;;  %v707_v17 = vunpack.c.0.s8 %v383_v2  ;;  %v387_v7 = vld [vmem:[%s2894_s18 + $0x298] sm:$0xff] }
 0x1a4   : > { %v1488_v18 = vmul.f32 %v2935_v33, %v1082_v6  ;;  %v1089_v20 = vcvt.s32.f32 %v705_v8  ;;  %v1093_v16 = vcvt.s32.f32 %v709_v11  ;;  %v711_v22 = vunpack.c.1.s8 %v383_v2 }
 0x1a5   : > { %1993 = vmatprep.subr.bf16.mxu1 %v1725_v14  ;;  %v1722_v24 = vpack.c.bf16 %v1490_v15, %v1486_v3  ;;  %v1492_v25 = vmul.f32 %v2935_v33, %v1086_v13  ;;  %v1091_v29 = vcvt.s32.f32 %v707_v17  ;;  %v704_v21 = vunpack.c.0.s8 %v380_v9  ;;  %v384_v13 = vld [vmem:[%s2894_s18 + $0x280] sm:$0xff] }
 0x1a6   : > { %v1495_v30 = vmul.f32 %v2927_v27, %v1089_v20  ;;  %v1499_v34 = vmul.f32 %v2927_v27, %v1093_v16  ;;  %v1095_v35 = vcvt.s32.f32 %v711_v22  ;;  %v708_v26 = vunpack.c.1.s8 %v380_v9 }
 0x1a7   : > { %1871 = vmatpush1.bf16.msra.mxu0 %v1722_v24  ;;  %v1724_v37 = vpack.c.bf16 %v1492_v25, %v1488_v18  ;;  %v1497_v38 = vmul.f32 %v2929_v28, %v1091_v29  ;;  %v1088_v32 = vcvt.s32.f32 %v704_v21  ;;  %v706_v40 = vunpack.c.0.s8 %v382_v12 }
 0x1a8   : > { %v1727_v41 = vpack.c.bf16 %v1499_v34, %v1495_v30  ;;  %v1501_v36 = vmul.f32 %v2929_v28, %v1095_v35  ;;  %v1092_v43 = vcvt.s32.f32 %v708_v26  ;;  %v710_v44 = vunpack.c.1.s8 %v382_v12 }
 0x1a9   : > { %1994 = vmatpush1.bf16.msra.mxu1 %v1724_v37  ;;  %v1494_v39 = vmul.f32 %v2933_v31, %v1088_v32  ;;  %v1090_v46 = vcvt.s32.f32 %v706_v40  ;;  %v713_v47 = vunpack.c.2.s8 %v381_v59  ;;  %v717_v42 = vunpack.c.3.s8 %v381_v59 }
 0x1aa   : > { %1872 = vmatprep.subr.bf16.mxu0 %v1727_v41  ;;  %v1729_v49 = vpack.c.bf16 %v1501_v36, %v1497_v38  ;;  %v1498_v50 = vmul.f32 %v2933_v31, %v1092_v43  ;;  %v1094_v45 = vcvt.s32.f32 %v710_v44  ;;  %v715_v52 = vunpack.c.2.s8 %v383_v2 }
 0x1ab   : > { %v1496_v51 = vmul.f32 %v2935_v33, %v1090_v46  ;;  %v1097_v48 = vcvt.s32.f32 %v713_v47  ;;  %v1101_v53 = vcvt.s32.f32 %v717_v42  ;;  %v719_v55 = vunpack.c.3.s8 %v383_v2 }
 0x1ac   : > { %1995 = vmatprep.subr.bf16.mxu1 %v1729_v49  ;;  %v1726_v56 = vpack.c.bf16 %v1498_v50, %v1494_v39  ;;  %v1500_v58 = vmul.f32 %v2935_v33, %v1094_v45  ;;  %v1099_v54 = vcvt.s32.f32 %v715_v52  ;;  %v712_v57 = vunpack.c.2.s8 %v380_v9 }
 0x1ad   : > { %v1503_v61 = vmul.f32 %v2927_v27, %v1097_v48  ;;  %v1507_v59 = vmul.f32 %v2927_v27, %v1101_v53  ;;  %v1103_v62 = vcvt.s32.f32 %v719_v55  ;;  %v716_v1 = vunpack.c.3.s8 %v380_v9 }
 0x1ae   : > { %1873 = vmatpush1.bf16.msra.mxu0 %v1726_v56  ;;  %v1728_v60 = vpack.c.bf16 %v1500_v58, %v1496_v51  ;;  %v1505_v4 = vmul.f32 %v2929_v28, %v1099_v54  ;;  %v1096_v2 = vcvt.s32.f32 %v712_v57  ;;  %v714_v0 = vunpack.c.2.s8 %v382_v12 }
 0x1af   : > { %v1731_v5 = vpack.c.bf16 %v1507_v59, %v1503_v61  ;;  %v1509_v3 = vmul.f32 %v2929_v28, %v1103_v62  ;;  %v1100_v6 = vcvt.s32.f32 %v716_v1  ;;  %v718_v8 = vunpack.c.3.s8 %v382_v12  ;;  %v386_v12 = vld [vmem:[%s2894_s18 + $0x290] sm:$0xff] }
 0x1b0   : > { %1996 = vmatpush1.bf16.msra.mxu1 %v1728_v60  ;;  %v1502_v11 = vmul.f32 %v2933_v31, %v1096_v2  ;;  %v1098_v14 = vcvt.s32.f32 %v714_v0  ;;  %v721_v9 = vunpack.c.0.s8 %v385_v63  ;;  %v725_v15 = vunpack.c.1.s8 %v385_v63  ;;  %v389_v2 = vld [vmem:[%s2894_s18 + $0x2a8] sm:$0xff] }
 0x1b1   : > { %1874 = vmatprep.subr.bf16.mxu0 %v1731_v5  ;;  %v1733_v17 = vpack.c.bf16 %v1509_v3, %v1505_v4  ;;  %v1506_v18 = vmul.f32 %v2933_v31, %v1100_v6  ;;  %v1102_v20 = vcvt.s32.f32 %v718_v8  ;;  %v723_v16 = vunpack.c.0.s8 %v387_v7  ;;  %v391_v6 = vld [vmem:[%s2894_s18 + $0x2b8] sm:$0xff] }
 0x1b2   : > { %v1504_v22 = vmul.f32 %v2935_v33, %v1098_v14  ;;  %v1105_v24 = vcvt.s32.f32 %v721_v9  ;;  %v1109_v25 = vcvt.s32.f32 %v725_v15  ;;  %v727_v29 = vunpack.c.1.s8 %v387_v7 }
 0x1b3   : > { %1997 = vmatprep.subr.bf16.mxu1 %v1733_v17  ;;  %v1730_v21 = vpack.c.bf16 %v1506_v18, %v1502_v11  ;;  %v1508_v30 = vmul.f32 %v2935_v33, %v1102_v20  ;;  %v1107_v34 = vcvt.s32.f32 %v723_v16  ;;  %v720_v35 = vunpack.c.0.s8 %v384_v13  ;;  %v388_v20 = vld [vmem:[%s2894_s18 + $0x2a0] sm:$0xff] }
 0x1b4   : > { %v1511_v26 = vmul.f32 %v2927_v27, %v1105_v24  ;;  %v1515_v37 = vmul.f32 %v2927_v27, %v1109_v25  ;;  %v1111_v38 = vcvt.s32.f32 %v727_v29  ;;  %v724_v32 = vunpack.c.1.s8 %v384_v13 }
 0x1b5   : > { %1875 = vmatpush1.bf16.msra.mxu0 %v1730_v21  ;;  %v1732_v40 = vpack.c.bf16 %v1508_v30, %v1504_v22  ;;  %v1513_v41 = vmul.f32 %v2929_v28, %v1107_v34  ;;  %v1104_v36 = vcvt.s32.f32 %v720_v35  ;;  %v722_v43 = vunpack.c.0.s8 %v386_v12 }
 0x1b6   : > { %v1735_v44 = vpack.c.bf16 %v1515_v37, %v1511_v26  ;;  %v1517_v39 = vmul.f32 %v2929_v28, %v1111_v38  ;;  %v1108_v46 = vcvt.s32.f32 %v724_v32  ;;  %v726_v47 = vunpack.c.1.s8 %v386_v12 }
 0x1b7   : > { %1998 = vmatpush1.bf16.msra.mxu1 %v1732_v40  ;;  %v1510_v42 = vmul.f32 %v2933_v31, %v1104_v36  ;;  %v1106_v49 = vcvt.s32.f32 %v722_v43  ;;  %v729_v50 = vunpack.c.2.s8 %v385_v63  ;;  %v733_v45 = vunpack.c.3.s8 %v385_v63 }
 0x1b8   : > { %1876 = vmatprep.subr.bf16.mxu0 %v1735_v44  ;;  %v1737_v52 = vpack.c.bf16 %v1517_v39, %v1513_v41  ;;  %v1514_v51 = vmul.f32 %v2933_v31, %v1108_v46  ;;  %v1110_v48 = vcvt.s32.f32 %v726_v47  ;;  %v731_v53 = vunpack.c.2.s8 %v387_v7 }
 0x1b9   : > { %v1512_v55 = vmul.f32 %v2935_v33, %v1106_v49  ;;  %v1113_v56 = vcvt.s32.f32 %v729_v50  ;;  %v1117_v58 = vcvt.s32.f32 %v733_v45  ;;  %v735_v54 = vunpack.c.3.s8 %v387_v7 }
 0x1ba   : > { %1999 = vmatprep.subr.bf16.mxu1 %v1737_v52  ;;  %v1734_v57 = vpack.c.bf16 %v1514_v51, %v1510_v42  ;;  %v1516_v61 = vmul.f32 %v2935_v33, %v1110_v48  ;;  %v1115_v59 = vcvt.s32.f32 %v731_v53  ;;  %v728_v62 = vunpack.c.2.s8 %v384_v13 }
 0x1bb   : > { %v1519_v1 = vmul.f32 %v2927_v27, %v1113_v56  ;;  %v1523_v63 = vmul.f32 %v2927_v27, %v1117_v58  ;;  %v1119_v60 = vcvt.s32.f32 %v735_v54  ;;  %v732_v4 = vunpack.c.3.s8 %v384_v13 }
 0x1bc   : > { %1877 = vmatpush1.bf16.msra.mxu0 %v1734_v57  ;;  %v1736_v0 = vpack.c.bf16 %v1516_v61, %v1512_v55  ;;  %v1521_v5 = vmul.f32 %v2929_v28, %v1115_v59  ;;  %v1112_v7 = vcvt.s32.f32 %v728_v62  ;;  %v730_v3 = vunpack.c.2.s8 %v386_v12 }
 0x1bd   : > { %v1739_v8 = vpack.c.bf16 %v1523_v63, %v1519_v1  ;;  %v1525_v11 = vmul.f32 %v2929_v28, %v1119_v60  ;;  %v1116_v14 = vcvt.s32.f32 %v732_v4  ;;  %v734_v9 = vunpack.c.3.s8 %v386_v12  ;;  %v390_v12 = vld [vmem:[%s2894_s18 + $0x2b0] sm:$0xff] }
 0x1be   : > { %2000 = vmatpush1.bf16.msra.mxu1 %v1736_v0  ;;  %v1518_v15 = vmul.f32 %v2933_v31, %v1112_v7  ;;  %v1114_v17 = vcvt.s32.f32 %v730_v3  ;;  %v737_v13 = vunpack.c.0.s8 %v389_v2  ;;  %v741_v18 = vunpack.c.1.s8 %v389_v2  ;;  %v393_v7 = vld [vmem:[%s2894_s18 + $0x2c8] sm:$0xff] }
 0x1bf   : > { %1878 = vmatprep.subr.bf16.mxu0 %v1739_v8  ;;  %v1741_v16 = vpack.c.bf16 %v1525_v11, %v1521_v5  ;;  %v1522_v22 = vmul.f32 %v2933_v31, %v1116_v14  ;;  %v1118_v24 = vcvt.s32.f32 %v734_v9  ;;  %v739_v25 = vunpack.c.0.s8 %v391_v6  ;;  %v395_v14 = vld [vmem:[%s2894_s18 + $0x2d8] sm:$0xff] }
 0x1c0   : > { %v1520_v29 = vmul.f32 %v2935_v33, %v1114_v17  ;;  %v1121_v21 = vcvt.s32.f32 %v737_v13  ;;  %v1125_v30 = vcvt.s32.f32 %v741_v18  ;;  %v743_v34 = vunpack.c.1.s8 %v391_v6 }
 0x1c1   : > { %2001 = vmatprep.subr.bf16.mxu1 %v1741_v16  ;;  %v1738_v35 = vpack.c.bf16 %v1522_v22, %v1518_v15  ;;  %v1524_v26 = vmul.f32 %v2935_v33, %v1118_v24  ;;  %v1123_v37 = vcvt.s32.f32 %v739_v25  ;;  %v736_v38 = vunpack.c.0.s8 %v388_v20  ;;  %v392_v24 = vld [vmem:[%s2894_s18 + $0x2c0] sm:$0xff] }
 0x1c2   : > { %v1527_v32 = vmul.f32 %v2927_v27, %v1121_v21  ;;  %v1531_v40 = vmul.f32 %v2927_v27, %v1125_v30  ;;  %v1127_v41 = vcvt.s32.f32 %v743_v34  ;;  %v740_v36 = vunpack.c.1.s8 %v388_v20 }
 0x1c3   : > { %1879 = vmatpush1.bf16.msra.mxu0 %v1738_v35  ;;  %v1740_v43 = vpack.c.bf16 %v1524_v26, %v1520_v29  ;;  %v1529_v44 = vmul.f32 %v2929_v28, %v1123_v37  ;;  %v1120_v39 = vcvt.s32.f32 %v736_v38  ;;  %v738_v46 = vunpack.c.0.s8 %v390_v12 }
 0x1c4   : > { %v1743_v47 = vpack.c.bf16 %v1531_v40, %v1527_v32  ;;  %v1533_v42 = vmul.f32 %v2929_v28, %v1127_v41  ;;  %v1124_v49 = vcvt.s32.f32 %v740_v36  ;;  %v742_v50 = vunpack.c.1.s8 %v390_v12 }
 0x1c5   : > { %2002 = vmatpush1.bf16.msra.mxu1 %v1740_v43  ;;  %v1526_v45 = vmul.f32 %v2933_v31, %v1120_v39  ;;  %v1122_v52 = vcvt.s32.f32 %v738_v46  ;;  %v745_v51 = vunpack.c.2.s8 %v389_v2  ;;  %v749_v48 = vunpack.c.3.s8 %v389_v2 }
 0x1c6   : > { %1880 = vmatprep.subr.bf16.mxu0 %v1743_v47  ;;  %v1745_v53 = vpack.c.bf16 %v1533_v42, %v1529_v44  ;;  %v1530_v55 = vmul.f32 %v2933_v31, %v1124_v49  ;;  %v1126_v56 = vcvt.s32.f32 %v742_v50  ;;  %v747_v58 = vunpack.c.2.s8 %v391_v6 }
 0x1c7   : > { %v1528_v54 = vmul.f32 %v2935_v33, %v1122_v52  ;;  %v1129_v57 = vcvt.s32.f32 %v745_v51  ;;  %v1133_v61 = vcvt.s32.f32 %v749_v48  ;;  %v751_v59 = vunpack.c.3.s8 %v391_v6 }
 0x1c8   : > { %2003 = vmatprep.subr.bf16.mxu1 %v1745_v53  ;;  %v1742_v62 = vpack.c.bf16 %v1530_v55, %v1526_v45  ;;  %v1532_v1 = vmul.f32 %v2935_v33, %v1126_v56  ;;  %v1131_v63 = vcvt.s32.f32 %v747_v58  ;;  %v744_v60 = vunpack.c.2.s8 %v388_v20 }
 0x1c9   : > { %v1535_v4 = vmul.f32 %v2927_v27, %v1129_v57  ;;  %v1539_v2 = vmul.f32 %v2927_v27, %v1133_v61  ;;  %v1135_v0 = vcvt.s32.f32 %v751_v59  ;;  %v748_v5 = vunpack.c.3.s8 %v388_v20 }
 0x1ca   : > { %1881 = vmatpush1.bf16.msra.mxu0 %v1742_v62  ;;  %v1744_v3 = vpack.c.bf16 %v1532_v1, %v1528_v54  ;;  %v1537_v8 = vmul.f32 %v2929_v28, %v1131_v63  ;;  %v1128_v6 = vcvt.s32.f32 %v744_v60  ;;  %v746_v11 = vunpack.c.2.s8 %v390_v12 }
 0x1cb   : > { %v1747_v9 = vpack.c.bf16 %v1539_v2, %v1535_v4  ;;  %v1541_v15 = vmul.f32 %v2929_v28, %v1135_v0  ;;  %v1132_v17 = vcvt.s32.f32 %v748_v5  ;;  %v750_v13 = vunpack.c.3.s8 %v390_v12  ;;  %v394_v12 = vld [vmem:[%s2894_s18 + $0x2d0] sm:$0xff] }
 0x1cc   : > { %2004 = vmatpush1.bf16.msra.mxu1 %v1744_v3  ;;  %v1534_v18 = vmul.f32 %v2933_v31, %v1128_v6  ;;  %v1130_v16 = vcvt.s32.f32 %v746_v11  ;;  %v753_v20 = vunpack.c.0.s8 %v393_v7  ;;  %v757_v22 = vunpack.c.1.s8 %v393_v7  ;;  %v397_v6 = vld [vmem:[%s2894_s18 + $0x2e8] sm:$0xff] }
 0x1cd   : > { %1882 = vmatprep.subr.bf16.mxu0 %v1747_v9  ;;  %v1749_v25 = vpack.c.bf16 %v1541_v15, %v1537_v8  ;;  %v1538_v29 = vmul.f32 %v2933_v31, %v1132_v17  ;;  %v1134_v21 = vcvt.s32.f32 %v750_v13  ;;  %v755_v30 = vunpack.c.0.s8 %v395_v14  ;;  %v399_v17 = vld [vmem:[%s2894_s18 + $0x2f8] sm:$0xff] }
 0x1ce   : > { %v1536_v34 = vmul.f32 %v2935_v33, %v1130_v16  ;;  %v1137_v35 = vcvt.s32.f32 %v753_v20  ;;  %v1141_v26 = vcvt.s32.f32 %v757_v22  ;;  %v759_v37 = vunpack.c.1.s8 %v395_v14 }
 0x1cf   : > { %2005 = vmatprep.subr.bf16.mxu1 %v1749_v25  ;;  %v1746_v38 = vpack.c.bf16 %v1538_v29, %v1534_v18  ;;  %v1540_v32 = vmul.f32 %v2935_v33, %v1134_v21  ;;  %v1139_v40 = vcvt.s32.f32 %v755_v30  ;;  %v752_v41 = vunpack.c.0.s8 %v392_v24  ;;  %v396_v21 = vld [vmem:[%s2894_s18 + $0x2e0] sm:$0xff] }
 0x1d0   : > { %v1543_v36 = vmul.f32 %v2927_v27, %v1137_v35  ;;  %v1547_v43 = vmul.f32 %v2927_v27, %v1141_v26  ;;  %v1143_v44 = vcvt.s32.f32 %v759_v37  ;;  %v756_v39 = vunpack.c.1.s8 %v392_v24 }
 0x1d1   : > { %1883 = vmatpush1.bf16.msra.mxu0 %v1746_v38  ;;  %v1748_v46 = vpack.c.bf16 %v1540_v32, %v1536_v34  ;;  %v1545_v47 = vmul.f32 %v2929_v28, %v1139_v40  ;;  %v1136_v42 = vcvt.s32.f32 %v752_v41  ;;  %v754_v49 = vunpack.c.0.s8 %v394_v12 }
 0x1d2   : > { %v1751_v50 = vpack.c.bf16 %v1547_v43, %v1543_v36  ;;  %v1549_v45 = vmul.f32 %v2929_v28, %v1143_v44  ;;  %v1140_v52 = vcvt.s32.f32 %v756_v39  ;;  %v758_v51 = vunpack.c.1.s8 %v394_v12 }
 0x1d3   : > { %2006 = vmatpush1.bf16.msra.mxu1 %v1748_v46  ;;  %v1542_v48 = vmul.f32 %v2933_v31, %v1136_v42  ;;  %v1138_v53 = vcvt.s32.f32 %v754_v49  ;;  %v761_v55 = vunpack.c.2.s8 %v393_v7  ;;  %v765_v56 = vunpack.c.3.s8 %v393_v7 }
 0x1d4   : > { %1884 = vmatprep.subr.bf16.mxu0 %v1751_v50  ;;  %v1753_v58 = vpack.c.bf16 %v1549_v45, %v1545_v47  ;;  %v1546_v54 = vmul.f32 %v2933_v31, %v1140_v52  ;;  %v1142_v57 = vcvt.s32.f32 %v758_v51  ;;  %v763_v61 = vunpack.c.2.s8 %v395_v14 }
 0x1d5   : > { %v1544_v59 = vmul.f32 %v2935_v33, %v1138_v53  ;;  %v1145_v62 = vcvt.s32.f32 %v761_v55  ;;  %v1149_v1 = vcvt.s32.f32 %v765_v56  ;;  %v767_v63 = vunpack.c.3.s8 %v395_v14 }
 0x1d6   : > { %2007 = vmatprep.subr.bf16.mxu1 %v1753_v58  ;;  %v1750_v60 = vpack.c.bf16 %v1546_v54, %v1542_v48  ;;  %v1548_v4 = vmul.f32 %v2935_v33, %v1142_v57  ;;  %v1147_v2 = vcvt.s32.f32 %v763_v61  ;;  %v760_v0 = vunpack.c.2.s8 %v392_v24 }
 0x1d7   : > { %v1551_v5 = vmul.f32 %v2927_v27, %v1145_v62  ;;  %v1555_v7 = vmul.f32 %v2927_v27, %v1149_v1  ;;  %v1151_v3 = vcvt.s32.f32 %v767_v63  ;;  %v764_v8 = vunpack.c.3.s8 %v392_v24 }
 0x1d8   : > { %1885 = vmatpush1.bf16.msra.mxu0 %v1750_v60  ;;  %v1752_v11 = vpack.c.bf16 %v1548_v4, %v1544_v59  ;;  %v1553_v9 = vmul.f32 %v2929_v28, %v1147_v2  ;;  %v1144_v14 = vcvt.s32.f32 %v760_v0  ;;  %v762_v15 = vunpack.c.2.s8 %v394_v12 }
 0x1d9   : > { %v1755_v13 = vpack.c.bf16 %v1555_v7, %v1551_v5  ;;  %v1557_v18 = vmul.f32 %v2929_v28, %v1151_v3  ;;  %v1148_v16 = vcvt.s32.f32 %v764_v8  ;;  %v766_v20 = vunpack.c.3.s8 %v394_v12  ;;  %v398_v12 = vld [vmem:[%s2894_s18 + $0x2f0] sm:$0xff] }
 0x1da   : > { %2008 = vmatpush1.bf16.msra.mxu1 %v1752_v11  ;;  %v1550_v22 = vmul.f32 %v2933_v31, %v1144_v14  ;;  %v1146_v25 = vcvt.s32.f32 %v762_v15  ;;  %v769_v24 = vunpack.c.0.s8 %v397_v6  ;;  %v773_v29 = vunpack.c.1.s8 %v397_v6  ;;  %v1771_v14 = vld [vmem:[%s3609_s0 + $0x28] sm:$0xff] }
 0x1db   : > { %1886 = vmatprep.subr.bf16.mxu0 %v1755_v13  ;;  %v1757_v30 = vpack.c.bf16 %v1557_v18, %v1553_v9  ;;  %v1554_v34 = vmul.f32 %v2933_v31, %v1148_v16  ;;  %v1150_v35 = vcvt.s32.f32 %v766_v20  ;;  %v771_v26 = vunpack.c.0.s8 %v399_v17 }
 0x1dc   : > { %v1552_v37 = vmul.f32 %v2935_v33, %v1146_v25  ;;  %v1153_v38 = vcvt.s32.f32 %v769_v24  ;;  %v1157_v32 = vcvt.s32.f32 %v773_v29  ;;  %v775_v40 = vunpack.c.1.s8 %v399_v17 }
 0x1dd   : > { %2009 = vmatprep.subr.bf16.mxu1 %v1757_v30  ;;  %v1754_v41 = vpack.c.bf16 %v1554_v34, %v1550_v22  ;;  %v1556_v36 = vmul.f32 %v2935_v33, %v1150_v35  ;;  %v1155_v43 = vcvt.s32.f32 %v771_v26  ;;  %v768_v44 = vunpack.c.0.s8 %v396_v21  ;;  %v1770_v35 = vld [vmem:[%s3609_s0 + $0x20] sm:$0xff] }
 0x1de   : > { %v1559_v39 = vmul.f32 %v2927_v27, %v1153_v38  ;;  %v1563_v46 = vmul.f32 %v2927_v27, %v1157_v32  ;;  %v1159_v47 = vcvt.s32.f32 %v775_v40  ;;  %v772_v42 = vunpack.c.1.s8 %v396_v21 }
 0x1df   : > { %1887 = vmatpush1.bf16.msra.mxu0 %v1754_v41  ;;  %v1756_v49 = vpack.c.bf16 %v1556_v36, %v1552_v37  ;;  %v1561_v50 = vmul.f32 %v2929_v28, %v1155_v43  ;;  %v1152_v45 = vcvt.s32.f32 %v768_v44  ;;  %v770_v52 = vunpack.c.0.s8 %v398_v12 }
 0x1e0   : > { %v1759_v51 = vpack.c.bf16 %v1563_v46, %v1559_v39  ;;  %v1565_v48 = vmul.f32 %v2929_v28, %v1159_v47  ;;  %v1156_v53 = vcvt.s32.f32 %v772_v42  ;;  %v774_v55 = vunpack.c.1.s8 %v398_v12  ;;  %v2028_v46 = vld [vmem:[#allocation2] sm:$0xff] }
 0x1e1   : > { %2010 = vmatpush1.bf16.msra.mxu1 %v1756_v49  ;;  %v1558_v56 = vmul.f32 %v2933_v31, %v1152_v45  ;;  %v1154_v58 = vcvt.s32.f32 %v770_v52  ;;  %v777_v54 = vunpack.c.2.s8 %v397_v6  ;;  %v781_v57 = vunpack.c.3.s8 %v397_v6 }
 0x1e2   : > { %1888 = vmatprep.subr.bf16.mxu0 %v1759_v51  ;;  %v1761_v61 = vpack.c.bf16 %v1565_v48, %v1561_v50  ;;  %v1562_v59 = vmul.f32 %v2933_v31, %v1156_v53  ;;  %v1158_v62 = vcvt.s32.f32 %v774_v55  ;;  %v779_v1 = vunpack.c.2.s8 %v399_v17  ;;  %v2490_v53 = vld [vmem:[#allocation7 + $0x40] sm:$0xff] (!%p2348_p8)  }
 0x1e3   : > { %v1560_v63 = vmul.f32 %v2935_v33, %v1154_v58  ;;  %v1161_v60 = vcvt.s32.f32 %v777_v54  ;;  %v1165_v4 = vcvt.s32.f32 %v781_v57  ;;  %v783_v2 = vunpack.c.3.s8 %v399_v17  ;;  %v2491_v55 = vld [vmem:[#allocation7] sm:$0xff] (!%p2348_p8)   ;;  %v2493_v58 = vld [vmem:[#allocation7 + $0x8] sm:$0xff] (!%p2348_p8)   ;;  %v2494_v54 = vld [vmem:[#allocation7 + $0x50] sm:$0xff] (!%p2348_p8)  }
 0x1e4   : > { %2011 = vmatprep.subr.bf16.mxu1 %v1761_v61  ;;  %v1758_v0 = vpack.c.bf16 %v1562_v59, %v1558_v56  ;;  %v1564_v5 = vmul.f32 %v2935_v33, %v1158_v62  ;;  %v1163_v7 = vcvt.s32.f32 %v779_v1  ;;  %v776_v3 = vunpack.c.2.s8 %v396_v21  ;;  %v2492_v56 = vld [vmem:[#allocation7 + $0x48] sm:$0xff] (!%p2348_p8)   ;;  %v2495_v57 = vld [vmem:[#allocation7 + $0x10] sm:$0xff] (!%p2348_p8)   ;;  %v2496_v61 = vld [vmem:[#allocation7 + $0x58] sm:$0xff] (!%p2348_p8)  }
 0x1e5   : > { %v1567_v8 = vmul.f32 %v2927_v27, %v1161_v60  ;;  %v1571_v6 = vmul.f32 %v2927_v27, %v1165_v4  ;;  %v1167_v11 = vcvt.s32.f32 %v783_v2  ;;  %v780_v9 = vunpack.c.3.s8 %v396_v21  ;;  %v2497_v59 = vld [vmem:[#allocation7 + $0x18] sm:$0xff] (!%p2348_p8)   ;;  %v2498_v62 = vld [vmem:[#allocation7 + $0x60] sm:$0xff] (!%p2348_p8)   ;;  %v2501_v2 = vld [vmem:[#allocation7 + $0x28] sm:$0xff] (!%p2348_p8)  }
 0x1e6   : > { %1889 = vmatpush1.bf16.msra.mxu0 %v1758_v0  ;;  %v1760_v15 = vpack.c.bf16 %v1564_v5, %v1560_v63  ;;  %v1569_v17 = vmul.f32 %v2929_v28, %v1163_v7  ;;  %v1160_v13 = vcvt.s32.f32 %v776_v3  ;;  %v778_v18 = vunpack.c.2.s8 %v398_v12  ;;  %v2499_v1 = vld [vmem:[#allocation7 + $0x20] sm:$0xff] (!%p2348_p8)   ;;  %v2500_v63 = vld [vmem:[#allocation7 + $0x68] sm:$0xff] (!%p2348_p8)   ;;  %v2502_v5 = vld [vmem:[#allocation7 + $0x70] sm:$0xff] (!%p2348_p8)  }
 0x1e7   : > { %v1763_v16 = vpack.c.bf16 %v1571_v6, %v1567_v8  ;;  %v1573_v20 = vmul.f32 %v2929_v28, %v1167_v11  ;;  %v1164_v22 = vcvt.s32.f32 %v780_v9  ;;  %v782_v25 = vunpack.c.3.s8 %v398_v12  ;;  %v2503_v7 = vld [vmem:[#allocation7 + $0x30] sm:$0xff] (!%p2348_p8)   ;;  %v2504_v8 = vld [vmem:[#allocation7 + $0x78] sm:$0xff] (!%p2348_p8)  }
 0x1e8   : > { %2012 = vmatpush1.bf16.msra.mxu1 %v1760_v15  ;;  %v1566_v27 = vmul.f32 %v2933_v31, %v1160_v13  ;;  %v1162_v24 = vcvt.s32.f32 %v778_v18  ;;  %v1777_v29 = vpack.c.bf16 %v1771_v14, %v1771_v14  ;;  %v1776_v38 = vpack.c.bf16 %v1770_v35, %v1770_v35  ;;  %v2505_v11 = vld [vmem:[#allocation7 + $0x38] sm:$0xff] (!%p2348_p8)  }
 0x1e9   : > { %1890 = vmatprep.subr.bf16.mxu0 %v1763_v16  ;;  %v1765_v21 = vpack.c.bf16 %v1573_v20, %v1569_v17  ;;  %v1570_v30 = vmul.f32 %v2933_v31, %v1164_v22  ;;  %v1166_v34 = vcvt.s32.f32 %v782_v25  ;;  %vm2217_vm0 = vcmp.lt.s32.totalorder (!%p2348_p8), %v2919_v10, 4 }
 0x1ea   : > { %v1568_v26 = vmul.f32 %v2935_v33, %v1162_v24  ;;  %1892 = vmatprep.mubr.bf16.mxu0 %v1777_v29  ;;  %2015 = vmatprep.mubr.bf16.mxu1 %v1777_v29  ;;  %v2682_v17 = vmov (!%p2348_p8), 0.0  }
 0x1eb   : > { %2013 = vmatprep.subr.bf16.mxu1 %v1765_v21  ;;  %v1762_v28 = vpack.c.bf16 %v1570_v30, %v1566_v27  ;;  %v1572_v37 = vmul.f32 %v2935_v33, %v1166_v34  ;;  %v2029_v33 = vld [vmem:[#allocation2 + $0x8] sm:$0xff]  ;;  %v2365_v13 = vsel (!%p2348_p8), %vm2217_vm0, 1.0, %v2682_v17 }
 0x1ed   : > { %1891 = vmatpush1.bf16.msra.mxu0 %v1762_v28  ;;  %v1764_v32 = vpack.c.bf16 %v1572_v37, %v1568_v26 }
 0x1ee   : > { %2370 = vmatprep.subr.bf16.mxu0 (!%p2348_p8), %v2490_v53 }
 0x1ef   : > { %2014 = vmatpush1.bf16.msra.mxu1 %v1764_v32 }
 0x1f0   : > { %1893 = vmatmul.mubr.bf16.vlgmr.msra.gmra.mrb[0].mxu0 %v1776_v38 }
 0x1f1   : > { %2371 = vmatpush3.bf16.msra.mxu0 (!%p2348_p8), %v2491_v55 }
 0x1f2   : > { %2016 = vmatmul.mubr.bf16.vlgmr.msra.gmra.mrb[0].mxu1 %v1776_v38  ;;  %2372 = vmatprep.subr.bf16.mxu0 (!%p2348_p8), %v2492_v56 }
 0x1f5   : > { %2373 = vmatpush3.bf16.msra.mxu0 (!%p2348_p8), %v2493_v58 }
 0x1f6   : > { %2374 = vmatprep.subr.bf16.mxu0 (!%p2348_p8), %v2494_v54 }
 0x1f9   : > { %2375 = vmatpush3.bf16.msra.mxu0 (!%p2348_p8), %v2495_v57 }
 0x1fa   : > { %2376 = vmatprep.subr.bf16.mxu0 (!%p2348_p8), %v2496_v61 }
 0x1fd   : > { %2377 = vmatpush3.bf16.msra.mxu0 (!%p2348_p8), %v2497_v59 }
 0x1fe   : > { %2378 = vmatprep.subr.bf16.mxu0 (!%p2348_p8), %v2498_v62 }
 0x201   : > { %2379 = vmatpush3.bf16.msra.mxu0 (!%p2348_p8), %v2499_v1 }
 0x202   : > { %2380 = vmatprep.subr.bf16.mxu0 (!%p2348_p8), %v2500_v63 }
 0x205   : > { %2381 = vmatpush3.bf16.msra.mxu0 (!%p2348_p8), %v2501_v2 }
 0x206   : > { %2382 = vmatprep.subr.bf16.mxu0 (!%p2348_p8), %v2502_v5 }
 0x209   : > { %2383 = vmatpush3.bf16.msra.mxu0 (!%p2348_p8), %v2503_v7 }
 0x20a   : > { %2384 = vmatprep.subr.bf16.mxu0 (!%p2348_p8), %v2504_v8 }
 0x20d   : > { %2385 = vmatpush3.bf16.msra.mxu0 (!%p2348_p8), %v2505_v11 }
 0x2c3   : > { %v1894_v31 = vpop.f32.mrb[0].mxu0 }
 0x2c4   : > { %2482 = vtanh.f32 %v1894_v31  ;;  %v1896_v40 = vpop.f32.mrb[1].mxu0 }
 0x2c5   : > { %v2017_v12 = vpop.f32.mrb[0].mxu1  ;;  %2484 = vtanh.f32 %v1896_v40  ;;  %v1898_v41 = vpop.f32.mrb[2].mxu0 }
 0x2c6   : > { %2486 = vtanh.f32 %v2017_v12  ;;  %v2019_v36 = vpop.f32.mrb[1].mxu1  ;;  %v1899_v43 = vpop.f32.mrb[3].mxu0 }
 0x2c7   : > { %2488 = vtanh.f32 %v2019_v36  ;;  %v2021_v44 = vpop.f32.mrb[2].mxu1  ;;  %v2214_v43 = vld [vmem:[#allocation8] sm:$0xff] (!%p2348_p8) }
 0x2c8   : > { %v2022_v39 = vpop.f32.mrb[3].mxu1  ;;  %v2241_v44 = vrot.slane (!%p2348_p8), %v2214_v43, %v1172_v23 }
 0x2ce   : > { %v2483_v47 = vpop.eup %2482  ;;  %2039 = sbr.rel (%p2348_p8) target bundleno = 1006 (0x3ee), region = 64 }
 0x2cf   : > { %v2485_v42 = vpop.eup %2484  ;;  %v2030_v49 = vadd.f32 %v2483_v47, %v2028_v46  ;;  %v2249_v46 = vrot.slane (!%p2348_p8), %v2214_v43, %v1176_v19 }
 0x2d0   : > { %v2487_v50 = vpop.eup %2486  ;;  %v2031_v45 = vadd.f32 %v2485_v42, %v2029_v33 }
 0x2d1   : > { %v2489_v52 = vpop.eup %2488  ;;  %v2032_v51 = vadd.f32 %v2487_v50, %v2030_v49 }
 0x2d2   : > { %v2033_v48 = vadd.f32 %v2489_v52, %v2031_v45 }
 0x2d3   : > { %2034 = vst [vmem:[#allocation2] sm:$0xff] %v2032_v51 }
 0x2d4   : > { %2035 = vst [vmem:[#allocation2 + $0x8] sm:$0xff] %v2033_v48 }
 0x2da   : > { %v2040_v3 = vld [vmem:[#allocation2] sm:$0xff] }
 0x2db   : > { %v2041_v60 = vld [vmem:[#allocation2 + $0x8] sm:$0xff]  ;;  %v2042_v6 = vmul.f32 0.0625, %v2040_v3 }
 0x2dc   : > { %v2043_v4 = vmul.f32 0.0625, %v2041_v60 }
 0x2dd   : > { %v2044_v9 = vpack.c.bf16 %v2042_v6, %v2042_v6 }
 0x2de   : > { %v2045_v0 = vpack.c.bf16 %v2043_v4, %v2043_v4 }
 0x2e0   : > { %2206 = vmatprep.mubr.bf16.mxu0 %v2045_v0 }
 0x2e1   : > { %2207 = vmatmul.mubr.bf16.vlgmr.msra.gmra.mrb[0].mxu0 %v2044_v9 }
 0x3b4   : > { %v2386_v14 = vpop.f32.mrb[0].mxu0 }
 0x3b5   : > { %v2387_v15 = vpop.f32.mrb[1].mxu0 }
 0x3b6   : > { %v2388_v18 = vadd.f32 %v2387_v15, %v2386_v14  ;;  %v2389_v16 = vpop.f32.mrb[2].mxu0 }
 0x3b7   : > { %v2390_v20 = vpop.f32.mrb[3].mxu0 }
 0x3b8   : > { %v2220_v22 = vmul.f32 %v2388_v18, %v2365_v13 }
 0x3ba   : > { %v2221_v25 = vrot.slane %v2220_v22, 4 }
 0x3bc   : > { %v2222_v27 = vadd.f32 %v2221_v25, %v2220_v22 }
 0x3be   : > { %v2223_v24 = vrot.slane %v2222_v27, 2 }
 0x3c0   : > { %v2224_v29 = vadd.f32 %v2223_v24, %v2222_v27 }
 0x3c2   : > { %v2225_v21 = vrot.slane %v2224_v29, 1 }
 0x3c4   : > { %v2226_v30 = vadd.f32 %v2225_v21, %v2224_v29 }
 0x3c6   : > { %v2227_v34 = vmul.f32 0.25, %v2226_v30 }
 0x3c8   : > { %v2228_v35 = vsub.f32 %v2388_v18, %v2227_v34 }
 0x3ca   : > { %v2229_v26 = vmul.f32 %v2365_v13, %v2228_v35  ;;  %v2242_v39 = vmul.f32 %v2241_v44, %v2228_v35 }
 0x3cc   : > { %v2230_v28 = vmul.f32 %v2229_v26, %v2229_v26 }
 0x3ce   : > { %v2231_v37 = vrot.slane %v2230_v28, 4 }
 0x3d0   : > { %v2232_v38 = vadd.f32 %v2231_v37, %v2230_v28 }
 0x3d2   : > { %v2233_v32 = vrot.slane %v2232_v38, 2 }
 0x3d4   : > { %v2234_v31 = vadd.f32 %v2233_v32, %v2232_v38 }
 0x3d6   : > { %v2235_v40 = vrot.slane %v2234_v31, 1 }
 0x3d8   : > { %v2236_v12 = vadd.f32 %v2235_v40, %v2234_v31 }
 0x3da   : > { %v2237_v41 = vmul.f32 0.25, %v2236_v12 }
 0x3dc   : > { %v2243_v36 = vadd.f32 1e-05, %v2237_v41 }
 0x3de   : > { %2506 = vrsqrt.f32 %v2243_v36 }
 0x3e8   : > { %v2507_v33 = vpop.eup %2506 }
 0x3e9   : > { %v2245_v47 = vmul.f32 %v2507_v33, %v2242_v39 }
 0x3eb   : > { %v2250_v42 = vadd.f32 %v2249_v46, %v2245_v47 }
 0x3ed   : > { %2251 = vst [vmem:[%s3614_s5] sm:$0xff] %v2250_v42 }
 0x3ee PF: > { %p19_p10 = scmp.ge.s32.totalorder %s2735_s23, 10   ;;  %s3634_s18 = smov %s2662_s19 }
 0x3ef   : > { %s3635_s19 = smov %s2666_s20  ;;  %s3636_s20 = smov %s2745_s26 }
 0x3f0   : > { %s3637_s21 = smov %s2735_s23  ;;  %21 = sbr.rel (!%p19_p10) target bundleno = 8 (0x8), region = 105 }
 0x3f7   :  { %2263 = vsyncpa [#allocation4], 1 }
 0x3f8   :  { %2265 = vsyncpa [#allocation4 + $0x1], 1 }
 0x3f9   :  { %2266 = vsyncpa [#allocation6], 1 }
 0x3fa   :  { %2268 = vsyncpa [#allocation6 + $0x1], 1 }
 0x3fb   :  { %2269 = vsyncpa [#allocation9], 1 }

</bundles_post_ra>
